<compile_context>
chip_gen: v7x
topology: tpu7x:2x2x1
jax: 0.10.0
libtpu: 0.0.40
codegen_flags: <defaults>
</compile_context>

<pallas_src>
import jax
import jax.numpy as jnp
import numpy as np
from jax.experimental import pallas as pl
from jax.experimental.pallas import tpu as pltpu

EPS = 1e-5


def _round_up(x, m):
    return (x + m - 1) // m * m


def _make_fs_kernel(n_cam, n_lvl, n_ch, k_chunk):
    feat_w = n_lvl * n_ch          # per-camera feature lane width

    def kernel(pc_ref, ims_ref, l2i_ref, clvl_ref, coff_ref, cwi_ref,
               chf_ref, cwf_ref, rp_ref, feat_ref, out_ref, acc_ref):
        b = pl.program_id(0)
        n = pl.program_id(1)
        kc = pl.program_id(2)

        @pl.when(kc == 0)
        def _():
            acc_ref[...] = jnp.zeros_like(acc_ref)

        # ---- lidar -> image projection (VPU FMAs from SMEM scalars) --------
        pts = rp_ref[...].astype(jnp.float32)                     # (Q, 3)
        x = pts[:, 0:1] * (pc_ref[3] - pc_ref[0]) + pc_ref[0]
        y = pts[:, 1:2] * (pc_ref[4] - pc_ref[1]) + pc_ref[1]
        z = pts[:, 2:3] * (pc_ref[5] - pc_ref[2]) + pc_ref[2]

        mbase = b * (n_cam * 16) + n * 16
        m = [l2i_ref[mbase + j] for j in range(12)]                # rows 0..2
        px = x * m[0] + y * m[1] + z * m[2] + m[3]
        py = x * m[4] + y * m[5] + z * m[6] + m[7]
        pz = x * m[8] + y * m[9] + z * m[10] + m[11]

        rz = 1.0 / jnp.maximum(pz, EPS)                            # exact recip
        gx = (px * rz * (1.0 / ims_ref[1]) - 0.5) * 2.0            # (Q, 1)
        gy = (py * rz * (1.0 / ims_ref[0]) - 0.5) * 2.0

        # ---- per-chunk level metadata (SMEM scalars) ------------------------
        lvl = clvl_ref[kc]             # level id of this K chunk
        off = coff_ref[kc]             # flat element offset within the level
        w_i = cwi_ref[kc]              # level width  (int32)
        h_f = chf_ref[kc]              # level height (f32)
        w_f = cwf_ref[kc]              # level width  (f32)

        # align_corners=False pixel coordinates for this level.
        pxp = ((gx + 1.0) * w_f - 1.0) * 0.5
        pyp = ((gy + 1.0) * h_f - 1.0) * 0.5
        x0f = jnp.floor(pxp)
        y0f = jnp.floor(pyp)
        fx = pxp - x0f
        fy = pyp - y0f
        # Clamp before the int cast: behind-camera points can be huge.
        x0 = jnp.clip(x0f, -4.0, w_f + 2.0).astype(jnp.int32)
        y0 = jnp.clip(y0f, -4.0, h_f + 2.0).astype(jnp.int32)

        vx0 = (x0f >= 0.0) & (x0f < w_f)
        vx1 = (x0f >= -1.0) & (x0f < w_f - 1.0)
        vy0 = (y0f >= 0.0) & (y0f < h_f)
        vy1 = (y0f >= -1.0) & (y0f < h_f - 1.0)
        w00 = jnp.where(vx0 & vy0, (1.0 - fx) * (1.0 - fy), 0.0)
        w01 = jnp.where(vx1 & vy0, fx * (1.0 - fy), 0.0)
        w10 = jnp.where(vx0 & vy1, (1.0 - fx) * fy, 0.0)
        w11 = jnp.where(vx1 & vy1, fx * fy, 0.0)

        # One-hot bilinear weights built directly in flat (Q, K_CHUNK) lane
        # layout; out-of-range / wrapped corners carry zero weight, which
        # reproduces padding_mode='zeros' and makes K-padding lanes harmless.
        base = y0 * w_i + x0                                       # (Q, 1) int32
        fi = jax.lax.broadcasted_iota(jnp.int32, (1, k_chunk), 1) + off
        w2 = (jnp.where(fi == base, w00, 0.0) +
              jnp.where(fi == base + 1, w01, 0.0) +
              jnp.where(fi == base + w_i, w10, 0.0) +
              jnp.where(fi == base + (w_i + 1), w11, 0.0))         # (Q, K) f32

        feat_chunk = feat_ref[...]                                 # (K, C) bf16
        res = jax.lax.dot_general(
            w2.astype(feat_chunk.dtype), feat_chunk,
            (((1,), (0,)), ((), ())),
            preferred_element_type=jnp.float32)                    # (Q, C) f32
        acc_ref[lvl] = acc_ref[lvl] + res

        @pl.when(kc == pl.num_programs(2) - 1)
        def _():
            valid = ((pz > EPS) & (gx > -1.0) & (gx < 1.0) &
                     (gy > -1.0) & (gy < 1.0))
            for l in range(n_lvl):                                 # static unroll
                out_ref[:, l * n_ch:(l + 1) * n_ch] = acc_ref[l]
            out_ref[:, feat_w:feat_w + 1] = valid.astype(jnp.float32)

    return kernel


def feature_sampling_pallas(mlvl_feats, reference_points, pc_range, img_shape,
                            lidar2img, k_chunk=None):
    f32 = jnp.float32
    B, Q, _ = reference_points.shape
    N = int(lidar2img.shape[1])
    L = len(mlvl_feats)
    C = int(mlvl_feats[0].shape[2])

    level_hw = tuple((int(f.shape[3]), int(f.shape[4])) for f in mlvl_feats)
    max_hw = max(h * w for h, w in level_hw)
    if k_chunk is None:
        # Large enough to hold each toy level in one chunk; capped so the
        # per-step feature chunk + (Q, K_CHUNK) weight tile fit v7x VMEM at
        # production shapes.  Multiple of 128 -> lane-dense weight tile,
        # bf16-sublane-aligned feature chunk.
        k_chunk = max(128, min(2048, _round_up(max_hw, 128)))

    # Per-chunk metadata (chunks never straddle a level boundary).
    chunk_lvl, chunk_off, chunk_wi, chunk_hf, chunk_wf = [], [], [], [], []
    level_pad = []
    for l, (h, w) in enumerate(level_hw):
        hw = h * w
        n_c = -(-hw // k_chunk)
        level_pad.append(n_c * k_chunk)
        for c in range(n_c):
            chunk_lvl.append(l)
            chunk_off.append(c * k_chunk)
            chunk_wi.append(w)
            chunk_hf.append(float(h))
            chunk_wf.append(float(w))
    n_chunks = len(chunk_lvl)

    pc_range = jnp.asarray(pc_range, f32)
    img_shape = jnp.asarray(img_shape, f32)
    reference_points = jnp.asarray(reference_points, f32)
    l2i_flat = jnp.asarray(lidar2img, f32).reshape(B * N * 16)
    chunk_lvl = jnp.asarray(np.asarray(chunk_lvl, np.int32))
    chunk_off = jnp.asarray(np.asarray(chunk_off, np.int32))
    chunk_wi = jnp.asarray(np.asarray(chunk_wi, np.int32))
    chunk_hf = jnp.asarray(np.asarray(chunk_hf, np.float32))
    chunk_wf = jnp.asarray(np.asarray(chunk_wf, np.float32))

    # (B, N, C, H, W) -> (B, N, HW_pad, C) bf16, concatenated over levels along
    # the contraction axis; each level zero-padded to a K_CHUNK multiple.
    slabs = []
    for f, (h, w), hwp in zip(mlvl_feats, level_hw, level_pad):
        fl = jnp.transpose(jnp.asarray(f, f32).reshape(B, N, C, h * w),
                           (0, 1, 3, 2))                           # (B,N,HW,C)
        if hwp != h * w:
            fl = jnp.pad(fl, ((0, 0), (0, 0), (0, hwp - h * w), (0, 0)))
        slabs.append(fl)
    feats_cat = jnp.concatenate(slabs, axis=2).astype(jnp.bfloat16)  # (B,N,K,C)

    out_w = L * C + 1
    kernel = _make_fs_kernel(N, L, C, k_chunk)

    # Scoped-VMEM sizing: feature chunk (x2 buffers) + resident output block
    # (x2) + accumulator + weight tile / intermediates, with generous margin.
    est = (2 * k_chunk * C * 2 + 2 * Q * out_w * 4 + L * Q * C * 4 +
           2 * Q * 3 * 4 + 4 * Q * k_chunk * 4)
    vmem_limit = int(min(48 * 2 ** 20, max(32 * 2 ** 20, 2 * est)))

    smem = pl.BlockSpec(memory_space=pltpu.MemorySpace.SMEM)
    out = pl.pallas_call(
        kernel,
        grid=(B, N, n_chunks),
        in_specs=[
            smem,                                                  # pc_range (6,)
            smem,                                                  # img_shape (2,)
            smem,                                                  # lidar2img flat
            smem, smem, smem, smem, smem,                          # chunk metadata
            pl.BlockSpec((None, Q, 3), lambda b, n, kc: (b, 0, 0)),
            pl.BlockSpec((None, None, k_chunk, C),
                         lambda b, n, kc: (b, n, kc, 0)),
        ],
        out_specs=pl.BlockSpec((None, None, Q, out_w),
                               lambda b, n, kc: (b, n, 0, 0)),
        out_shape=jax.ShapeDtypeStruct((B, N, Q, out_w), f32),
        scratch_shapes=[pltpu.VMEM((L, Q, C), jnp.float32)],
        compiler_params=pltpu.CompilerParams(
            dimension_semantics=("parallel", "parallel", "arbitrary"),
            vmem_limit_bytes=vmem_limit),
    )(pc_range, img_shape, l2i_flat, chunk_lvl, chunk_off, chunk_wi,
      chunk_hf, chunk_wf, reference_points, feats_cat)

    # (B, N, Q, L*C) -> (B, C, Q, N, 1, L)
    feat_cols = out[..., :L * C].reshape(B, N, Q, L, C)
    sampled_feats = jnp.transpose(feat_cols, (0, 4, 2, 1, 3))[:, :, :, :, None, :]
    # packed per-camera in-frustum mask -> (B, 1, Q, N, 1, 1) bool
    mask = jnp.transpose(out[..., L * C] > 0.5,
                         (0, 2, 1))[:, None, :, :, None, None]
    reference_points_3d = reference_points
    return reference_points_3d, sampled_feats, mask


class PallasFS:
    """Mirrors PYTORCH_FS.forward signature."""

    def __call__(self, f1, f2, f3, f4, reference_points, pc_range, img_shape,
                 lidar2img):
        return feature_sampling_pallas([f1, f2, f3, f4], reference_points,
                                       pc_range, img_shape, lidar2img)


# ----------------------- pure numpy reference (for checking) ------------------
def _feature_sampling_ref(mlvl_feats, reference_points, pc_range, img_shape,
                          lidar2img):
    pc = np.asarray(pc_range, np.float32)
    rp = np.asarray(reference_points, np.float32)
    l2i = np.asarray(lidar2img, np.float32)
    B, Q, _ = rp.shape
    N = l2i.shape[1]
    pts = rp.copy()
    pts[..., 0] = pts[..., 0] * (pc[3] - pc[0]) + pc[0]
    pts[..., 1] = pts[..., 1] * (pc[4] - pc[1]) + pc[1]
    pts[..., 2] = pts[..., 2] * (pc[5] - pc[2]) + pc[2]
    pts4 = np.concatenate([pts, np.ones_like(pts[..., :1])], -1)     # (B,Q,4)
    proj = np.einsum('bnij,bqj->bnqi', l2i, pts4).astype(np.float32)  # (B,N,Q,4)
    eps = 1e-5
    mask = proj[..., 2:3] > eps
    uv = proj[..., 0:2] / np.maximum(proj[..., 2:3], eps)
    uv[..., 0] /= img_shape[1]
    uv[..., 1] /= img_shape[0]
    uv = (uv - 0.5) * 2.0
    mask = (mask & (uv[..., 0:1] > -1.0) & (uv[..., 0:1] < 1.0) &
            (uv[..., 1:2] > -1.0) & (uv[..., 1:2] < 1.0))            # (B,N,Q,1)
    sampled = []
    for feat in mlvl_feats:
        f = np.asarray(feat, np.float32)
        _, _, C, H, W = f.shape
        out = np.zeros((B, N, C, Q), np.float32)
        px = ((uv[..., 0] + 1.0) * W - 1.0) / 2.0
        py = ((uv[..., 1] + 1.0) * H - 1.0) / 2.0
        x0 = np.floor(px).astype(np.int64)
        y0 = np.floor(py).astype(np.int64)
        fx = px - x0
        fy = py - y0
        for b in range(B):
            for n in range(N):
                for q in range(Q):
                    val = np.zeros(C, np.float32)
                    for dx, dy in [(0, 0), (1, 0), (0, 1), (1, 1)]:
                        xi = x0[b, n, q] + dx
                        yi = y0[b, n, q] + dy
                        wgt = ((fx[b, n, q] if dx else 1.0 - fx[b, n, q]) *
                               (fy[b, n, q] if dy else 1.0 - fy[b, n, q]))
                        if 0 <= xi < W and 0 <= yi < H:
                            val += wgt * f[b, n, :, yi, xi]
                    out[b, n, :, q] = val
        sampled.append(out)
    sampled_feats = np.stack(
        [np.transpose(s, (0, 2, 3, 1))[..., None] for s in sampled], -1)
    mask_out = np.transpose(mask, (0, 2, 1, 3)).reshape(B, 1, Q, N, 1, 1)
    return rp, sampled_feats, mask_out


if __name__ == "__main__":
    key = jax.random.PRNGKey(0)
    B, N, C, Q = 2, 6, 8, 16              # nc6: fixed 6 cameras
    level_hw = [(16, 16), (8, 8), (4, 4), (2, 2)]

    keys = jax.random.split(key, 6)
    # Pre-round features to bf16-representable values so the kernel's bf16
    # feature path is lossless; residual error comes only from bf16 weights.
    mlvl_feats = [
        jax.random.normal(keys[i], (B, N, C, h, w), dtype=jnp.float32)
        .astype(jnp.bfloat16).astype(jnp.float32)
        for i, (h, w) in enumerate(level_hw)
    ]
    reference_points = jax.random.uniform(keys[4], (B, Q, 3), dtype=jnp.float32)

    pc_range = np.array([-10., -10., -5., 10., 10., 5.], np.float32)
    img_shape = np.array([64., 96.], np.float32)          # [H_img, W_img]

    # Deterministic 6-camera ring of projective lidar->image matrices.
    f_len, cx, cy = 40.0, img_shape[1] / 2.0, img_shape[0] / 2.0
    lidar2img = np.zeros((B, N, 4, 4), np.float32)
    for n in range(N):
        th = 2.0 * np.pi * n / N
        fwd = np.array([np.cos(th), np.sin(th), 0.0], np.float32)
        right = np.array([-np.sin(th), np.cos(th), 0.0], np.float32)
        up = np.array([0.0, 0.0, 1.0], np.float32)
        lidar2img[:, n, 0, :3] = f_len * right + cx * fwd
        lidar2img[:, n, 1, :3] = -f_len * up + cy * fwd
        lidar2img[:, n, 2, :3] = fwd
        lidar2img[:, n, 3, 3] = 1.0

    model = PallasFS()
    rp3d, sampled_feats, mask = model(*mlvl_feats, reference_points, pc_range,
                                      img_shape, lidar2img)
    jax.block_until_ready((rp3d, sampled_feats, mask))

    # Cross-check against a pure numpy reference (bf16 weights -> ~1e-2 tol).
    rp_ref, sf_ref, mask_ref = _feature_sampling_ref(
        [np.asarray(f) for f in mlvl_feats], np.asarray(reference_points),
        pc_range, img_shape, lidar2img)
    np.testing.assert_allclose(np.asarray(rp3d), rp_ref, atol=1e-5)
    np.testing.assert_allclose(np.asarray(sampled_feats), sf_ref,
                               rtol=1e-2, atol=1.5e-2)
    assert np.array_equal(np.asarray(mask), mask_ref)

    print("KERNEL_OK")
</pallas_src>

<mosaic_0001>
module attributes {stable_mosaic.version = 11 : i64} {
  func.func @kernel(%arg0: i32, %arg1: i32, %arg2: i32, %arg3: memref<6xf32, #tpu.memory_space<smem>>, %arg4: memref<2xf32, #tpu.memory_space<smem>>, %arg5: memref<192xf32, #tpu.memory_space<smem>>, %arg6: memref<4xi32, #tpu.memory_space<smem>>, %arg7: memref<4xi32, #tpu.memory_space<smem>>, %arg8: memref<4xi32, #tpu.memory_space<smem>>, %arg9: memref<4xf32, #tpu.memory_space<smem>>, %arg10: memref<4xf32, #tpu.memory_space<smem>>, %arg11: memref<1x16x3xf32, #tpu.memory_space<vmem>>, %arg12: memref<1x1x256x8xbf16, #tpu.memory_space<vmem>>, %arg13: memref<1x1x16x33xf32, #tpu.memory_space<vmem>>, %arg14: memref<4x16x8xf32, #tpu.memory_space<vmem>>) attributes {dimension_semantics = [#tpu.dimension_semantics<parallel>, #tpu.dimension_semantics<parallel>, #tpu.dimension_semantics<arbitrary>], iteration_bounds = array<i64: 2, 6, 4>, scalar_prefetch = 0 : i64, scratch_operands = 1 : i64, tpu.core_type = #tpu.core_type<tc>, window_params = [{transform_indices = @transform_0, window_bounds = array<i64: 6>}, {transform_indices = @transform_1, window_bounds = array<i64: 2>}, {transform_indices = @transform_2, window_bounds = array<i64: 192>}, {transform_indices = @transform_3, window_bounds = array<i64: 4>}, {transform_indices = @transform_4, window_bounds = array<i64: 4>}, {transform_indices = @transform_5, window_bounds = array<i64: 4>}, {transform_indices = @transform_6, window_bounds = array<i64: 4>}, {transform_indices = @transform_7, window_bounds = array<i64: 4>}, {transform_indices = @transform_8, window_bounds = array<i64: 1, 16, 3>}, {transform_indices = @transform_9, window_bounds = array<i64: 1, 1, 256, 8>}, {transform_indices = @transform_10, window_bounds = array<i64: 1, 1, 16, 33>}]} {
    %c0_i32 = arith.constant 0 : i32
    %0 = arith.cmpi eq, %arg2, %c0_i32 : i32
    %1 = arith.extui %0 : i1 to i32
    %c0_i32_0 = arith.constant 0 : i32
    %2 = arith.cmpi ne, %1, %c0_i32_0 : i32
    scf.if %2 {
      %cst_58 = arith.constant 0.000000e+00 : f32
      %270 = vector.broadcast %cst_58 : f32 to vector<4x16x8xf32>
      %c0_59 = arith.constant 0 : index
      %c0_60 = arith.constant 0 : index
      %c0_61 = arith.constant 0 : index
      %271 = vector.load %arg14[%c0_59, %c0_60, %c0_61] : memref<4x16x8xf32, #tpu.memory_space<vmem>>, vector<4x16x8xf32>
      tpu.vector_store %arg14[%c0_59, %c0_60, %c0_61], %270 {strides = array<i32>} : memref<4x16x8xf32, #tpu.memory_space<vmem>>, vector<4x16x8xf32>,
    } else {
    }
    %c0 = arith.constant 0 : index
    %c0_1 = arith.constant 0 : index
    %c0_2 = arith.constant 0 : index
    %3 = vector.load %arg11[%c0, %c0_1, %c0_2] : memref<1x16x3xf32, #tpu.memory_space<vmem>>, vector<1x16x3xf32>
    %4 = vector.shape_cast %3 : vector<1x16x3xf32> to vector<16x3xf32>
    %5 = vector.extract_strided_slice %4 {offsets = [0, 0], sizes = [16, 1], strides = [1, 1]} : vector<16x3xf32> to vector<16x1xf32>
    %c3 = arith.constant 3 : index
    %6 = memref.load %arg3[%c3] : memref<6xf32, #tpu.memory_space<smem>>
    %c0_3 = arith.constant 0 : index
    %7 = memref.load %arg3[%c0_3] : memref<6xf32, #tpu.memory_space<smem>>
    %8 = arith.subf %6, %7 : f32
    %9 = vector.broadcast %8 : f32 to vector<16x1xf32>
    %10 = arith.mulf %5, %9 : vector<16x1xf32>
    %c0_4 = arith.constant 0 : index
    %11 = memref.load %arg3[%c0_4] : memref<6xf32, #tpu.memory_space<smem>>
    %12 = vector.broadcast %11 : f32 to vector<16x1xf32>
    %13 = arith.addf %10, %12 : vector<16x1xf32>
    %14 = vector.extract_strided_slice %4 {offsets = [0, 1], sizes = [16, 1], strides = [1, 1]} : vector<16x3xf32> to vector<16x1xf32>
    %c4 = arith.constant 4 : index
    %15 = memref.load %arg3[%c4] : memref<6xf32, #tpu.memory_space<smem>>
    %c1 = arith.constant 1 : index
    %16 = memref.load %arg3[%c1] : memref<6xf32, #tpu.memory_space<smem>>
    %17 = arith.subf %15, %16 : f32
    %18 = vector.broadcast %17 : f32 to vector<16x1xf32>
    %19 = arith.mulf %14, %18 : vector<16x1xf32>
    %c1_5 = arith.constant 1 : index
    %20 = memref.load %arg3[%c1_5] : memref<6xf32, #tpu.memory_space<smem>>
    %21 = vector.broadcast %20 : f32 to vector<16x1xf32>
    %22 = arith.addf %19, %21 : vector<16x1xf32>
    %23 = vector.extract_strided_slice %4 {offsets = [0, 2], sizes = [16, 1], strides = [1, 1]} : vector<16x3xf32> to vector<16x1xf32>
    %c5 = arith.constant 5 : index
    %24 = memref.load %arg3[%c5] : memref<6xf32, #tpu.memory_space<smem>>
    %c2 = arith.constant 2 : index
    %25 = memref.load %arg3[%c2] : memref<6xf32, #tpu.memory_space<smem>>
    %26 = arith.subf %24, %25 : f32
    %27 = vector.broadcast %26 : f32 to vector<16x1xf32>
    %28 = arith.mulf %23, %27 : vector<16x1xf32>
    %c2_6 = arith.constant 2 : index
    %29 = memref.load %arg3[%c2_6] : memref<6xf32, #tpu.memory_space<smem>>
    %30 = vector.broadcast %29 : f32 to vector<16x1xf32>
    %31 = arith.addf %28, %30 : vector<16x1xf32>
    %c96_i32 = arith.constant 96 : i32
    %32 = arith.muli %arg0, %c96_i32 : i32
    %c16_i32 = arith.constant 16 : i32
    %33 = arith.muli %arg1, %c16_i32 : i32
    %34 = arith.addi %32, %33 : i32
    %c0_i32_7 = arith.constant 0 : i32
    %35 = arith.addi %34, %c0_i32_7 : i32
    %36 = arith.index_cast %35 : i32 to index
    %37 = memref.load %arg5[%36] : memref<192xf32, #tpu.memory_space<smem>>
    %c1_i32 = arith.constant 1 : i32
    %38 = arith.addi %34, %c1_i32 : i32
    %39 = arith.index_cast %38 : i32 to index
    %40 = memref.load %arg5[%39] : memref<192xf32, #tpu.memory_space<smem>>
    %c2_i32 = arith.constant 2 : i32
    %41 = arith.addi %34, %c2_i32 : i32
    %42 = arith.index_cast %41 : i32 to index
    %43 = memref.load %arg5[%42] : memref<192xf32, #tpu.memory_space<smem>>
    %c3_i32 = arith.constant 3 : i32
    %44 = arith.addi %34, %c3_i32 : i32
    %45 = arith.index_cast %44 : i32 to index
    %46 = memref.load %arg5[%45] : memref<192xf32, #tpu.memory_space<smem>>
    %c4_i32 = arith.constant 4 : i32
    %47 = arith.addi %34, %c4_i32 : i32
    %48 = arith.index_cast %47 : i32 to index
    %49 = memref.load %arg5[%48] : memref<192xf32, #tpu.memory_space<smem>>
    %c5_i32 = arith.constant 5 : i32
    %50 = arith.addi %34, %c5_i32 : i32
    %51 = arith.index_cast %50 : i32 to index
    %52 = memref.load %arg5[%51] : memref<192xf32, #tpu.memory_space<smem>>
    %c6_i32 = arith.constant 6 : i32
    %53 = arith.addi %34, %c6_i32 : i32
    %54 = arith.index_cast %53 : i32 to index
    %55 = memref.load %arg5[%54] : memref<192xf32, #tpu.memory_space<smem>>
    %c7_i32 = arith.constant 7 : i32
    %56 = arith.addi %34, %c7_i32 : i32
    %57 = arith.index_cast %56 : i32 to index
    %58 = memref.load %arg5[%57] : memref<192xf32, #tpu.memory_space<smem>>
    %c8_i32 = arith.constant 8 : i32
    %59 = arith.addi %34, %c8_i32 : i32
    %60 = arith.index_cast %59 : i32 to index
    %61 = memref.load %arg5[%60] : memref<192xf32, #tpu.memory_space<smem>>
    %c9_i32 = arith.constant 9 : i32
    %62 = arith.addi %34, %c9_i32 : i32
    %63 = arith.index_cast %62 : i32 to index
    %64 = memref.load %arg5[%63] : memref<192xf32, #tpu.memory_space<smem>>
    %c10_i32 = arith.constant 10 : i32
    %65 = arith.addi %34, %c10_i32 : i32
    %66 = arith.index_cast %65 : i32 to index
    %67 = memref.load %arg5[%66] : memref<192xf32, #tpu.memory_space<smem>>
    %c11_i32 = arith.constant 11 : i32
    %68 = arith.addi %34, %c11_i32 : i32
    %69 = arith.index_cast %68 : i32 to index
    %70 = memref.load %arg5[%69] : memref<192xf32, #tpu.memory_space<smem>>
    %71 = vector.broadcast %37 : f32 to vector<16x1xf32>
    %72 = arith.mulf %13, %71 : vector<16x1xf32>
    %73 = vector.broadcast %40 : f32 to vector<16x1xf32>
    %74 = arith.mulf %22, %73 : vector<16x1xf32>
    %75 = arith.addf %72, %74 : vector<16x1xf32>
    %76 = vector.broadcast %43 : f32 to vector<16x1xf32>
    %77 = arith.mulf %31, %76 : vector<16x1xf32>
    %78 = arith.addf %75, %77 : vector<16x1xf32>
    %79 = vector.broadcast %46 : f32 to vector<16x1xf32>
    %80 = arith.addf %78, %79 : vector<16x1xf32>
    %81 = vector.broadcast %49 : f32 to vector<16x1xf32>
    %82 = arith.mulf %13, %81 : vector<16x1xf32>
    %83 = vector.broadcast %52 : f32 to vector<16x1xf32>
    %84 = arith.mulf %22, %83 : vector<16x1xf32>
    %85 = arith.addf %82, %84 : vector<16x1xf32>
    %86 = vector.broadcast %55 : f32 to vector<16x1xf32>
    %87 = arith.mulf %31, %86 : vector<16x1xf32>
    %88 = arith.addf %85, %87 : vector<16x1xf32>
    %89 = vector.broadcast %58 : f32 to vector<16x1xf32>
    %90 = arith.addf %88, %89 : vector<16x1xf32>
    %91 = vector.broadcast %61 : f32 to vector<16x1xf32>
    %92 = arith.mulf %13, %91 : vector<16x1xf32>
    %93 = vector.broadcast %64 : f32 to vector<16x1xf32>
    %94 = arith.mulf %22, %93 : vector<16x1xf32>
    %95 = arith.addf %92, %94 : vector<16x1xf32>
    %96 = vector.broadcast %67 : f32 to vector<16x1xf32>
    %97 = arith.mulf %31, %96 : vector<16x1xf32>
    %98 = arith.addf %95, %97 : vector<16x1xf32>
    %99 = vector.broadcast %70 : f32 to vector<16x1xf32>
    %100 = arith.addf %98, %99 : vector<16x1xf32>
    %cst = arith.constant 9.99999974E-6 : f32
    %101 = vector.broadcast %cst : f32 to vector<16x1xf32>
    %102 = arith.maximumf %100, %101 : vector<16x1xf32>
    %cst_8 = arith.constant 1.000000e+00 : f32
    %103 = vector.broadcast %cst_8 : f32 to vector<16x1xf32>
    %104 = arith.divf %103, %102 : vector<16x1xf32>
    %105 = arith.mulf %80, %104 : vector<16x1xf32>
    %c1_9 = arith.constant 1 : index
    %106 = memref.load %arg4[%c1_9] : memref<2xf32, #tpu.memory_space<smem>>
    %cst_10 = arith.constant 1.000000e+00 : f32
    %107 = arith.divf %cst_10, %106 : f32
    %108 = vector.broadcast %107 : f32 to vector<16x1xf32>
    %109 = arith.mulf %105, %108 : vector<16x1xf32>
    %cst_11 = arith.constant 5.000000e-01 : f32
    %110 = vector.broadcast %cst_11 : f32 to vector<16x1xf32>
    %111 = arith.subf %109, %110 : vector<16x1xf32>
    %cst_12 = arith.constant 2.000000e+00 : f32
    %112 = vector.broadcast %cst_12 : f32 to vector<16x1xf32>
    %113 = arith.mulf %111, %112 : vector<16x1xf32>
    %114 = arith.mulf %90, %104 : vector<16x1xf32>
    %c0_13 = arith.constant 0 : index
    %115 = memref.load %arg4[%c0_13] : memref<2xf32, #tpu.memory_space<smem>>
    %cst_14 = arith.constant 1.000000e+00 : f32
    %116 = arith.divf %cst_14, %115 : f32
    %117 = vector.broadcast %116 : f32 to vector<16x1xf32>
    %118 = arith.mulf %114, %117 : vector<16x1xf32>
    %cst_15 = arith.constant 5.000000e-01 : f32
    %119 = vector.broadcast %cst_15 : f32 to vector<16x1xf32>
    %120 = arith.subf %118, %119 : vector<16x1xf32>
    %cst_16 = arith.constant 2.000000e+00 : f32
    %121 = vector.broadcast %cst_16 : f32 to vector<16x1xf32>
    %122 = arith.mulf %120, %121 : vector<16x1xf32>
    %123 = arith.index_cast %arg2 : i32 to index
    %124 = memref.load %arg6[%123] : memref<4xi32, #tpu.memory_space<smem>>
    %125 = arith.index_cast %arg2 : i32 to index
    %126 = memref.load %arg7[%125] : memref<4xi32, #tpu.memory_space<smem>>
    %127 = arith.index_cast %arg2 : i32 to index
    %128 = memref.load %arg8[%127] : memref<4xi32, #tpu.memory_space<smem>>
    %129 = arith.index_cast %arg2 : i32 to index
    %130 = memref.load %arg9[%129] : memref<4xf32, #tpu.memory_space<smem>>
    %131 = arith.index_cast %arg2 : i32 to index
    %132 = memref.load %arg10[%131] : memref<4xf32, #tpu.memory_space<smem>>
    %cst_17 = arith.constant 1.000000e+00 : f32
    %133 = vector.broadcast %cst_17 : f32 to vector<16x1xf32>
    %134 = arith.addf %113, %133 : vector<16x1xf32>
    %135 = vector.broadcast %132 : f32 to vector<16x1xf32>
    %136 = arith.mulf %134, %135 : vector<16x1xf32>
    %cst_18 = arith.constant 1.000000e+00 : f32
    %137 = vector.broadcast %cst_18 : f32 to vector<16x1xf32>
    %138 = arith.subf %136, %137 : vector<16x1xf32>
    %cst_19 = arith.constant 5.000000e-01 : f32
    %139 = vector.broadcast %cst_19 : f32 to vector<16x1xf32>
    %140 = arith.mulf %138, %139 : vector<16x1xf32>
    %cst_20 = arith.constant 1.000000e+00 : f32
    %141 = vector.broadcast %cst_20 : f32 to vector<16x1xf32>
    %142 = arith.addf %122, %141 : vector<16x1xf32>
    %143 = vector.broadcast %130 : f32 to vector<16x1xf32>
    %144 = arith.mulf %142, %143 : vector<16x1xf32>
    %cst_21 = arith.constant 1.000000e+00 : f32
    %145 = vector.broadcast %cst_21 : f32 to vector<16x1xf32>
    %146 = arith.subf %144, %145 : vector<16x1xf32>
    %cst_22 = arith.constant 5.000000e-01 : f32
    %147 = vector.broadcast %cst_22 : f32 to vector<16x1xf32>
    %148 = arith.mulf %146, %147 : vector<16x1xf32>
    %149 = math.floor %140 : vector<16x1xf32>
    %150 = math.floor %148 : vector<16x1xf32>
    %151 = arith.subf %140, %149 : vector<16x1xf32>
    %152 = arith.subf %148, %150 : vector<16x1xf32>
    %cst_23 = arith.constant 2.000000e+00 : f32
    %153 = arith.addf %132, %cst_23 : f32
    %cst_24 = arith.constant -4.000000e+00 : f32
    %154 = vector.broadcast %cst_24 : f32 to vector<16x1xf32>
    %155 = arith.maximumf %154, %149 : vector<16x1xf32>
    %156 = vector.broadcast %153 : f32 to vector<16x1xf32>
    %157 = arith.minimumf %156, %155 : vector<16x1xf32>
    %158 = arith.fptosi %157 : vector<16x1xf32> to vector<16x1xi32>
    %cst_25 = arith.constant 2.000000e+00 : f32
    %159 = arith.addf %130, %cst_25 : f32
    %cst_26 = arith.constant -4.000000e+00 : f32
    %160 = vector.broadcast %cst_26 : f32 to vector<16x1xf32>
    %161 = arith.maximumf %160, %150 : vector<16x1xf32>
    %162 = vector.broadcast %159 : f32 to vector<16x1xf32>
    %163 = arith.minimumf %162, %161 : vector<16x1xf32>
    %164 = arith.fptosi %163 : vector<16x1xf32> to vector<16x1xi32>
    %cst_27 = arith.constant 0.000000e+00 : f32
    %165 = vector.broadcast %cst_27 : f32 to vector<16x1xf32>
    %166 = arith.cmpf oge, %149, %165 : vector<16x1xf32>
    %167 = vector.broadcast %132 : f32 to vector<16x1xf32>
    %168 = arith.cmpf olt, %149, %167 : vector<16x1xf32>
    %169 = arith.andi %166, %168 : vector<16x1xi1>
    %cst_28 = arith.constant -1.000000e+00 : f32
    %170 = vector.broadcast %cst_28 : f32 to vector<16x1xf32>
    %171 = arith.cmpf oge, %149, %170 : vector<16x1xf32>
    %cst_29 = arith.constant 1.000000e+00 : f32
    %172 = arith.subf %132, %cst_29 : f32
    %173 = vector.broadcast %172 : f32 to vector<16x1xf32>
    %174 = arith.cmpf olt, %149, %173 : vector<16x1xf32>
    %175 = arith.andi %171, %174 : vector<16x1xi1>
    %cst_30 = arith.constant 0.000000e+00 : f32
    %176 = vector.broadcast %cst_30 : f32 to vector<16x1xf32>
    %177 = arith.cmpf oge, %150, %176 : vector<16x1xf32>
    %178 = vector.broadcast %130 : f32 to vector<16x1xf32>
    %179 = arith.cmpf olt, %150, %178 : vector<16x1xf32>
    %180 = arith.andi %177, %179 : vector<16x1xi1>
    %cst_31 = arith.constant -1.000000e+00 : f32
    %181 = vector.broadcast %cst_31 : f32 to vector<16x1xf32>
    %182 = arith.cmpf oge, %150, %181 : vector<16x1xf32>
    %cst_32 = arith.constant 1.000000e+00 : f32
    %183 = arith.subf %130, %cst_32 : f32
    %184 = vector.broadcast %183 : f32 to vector<16x1xf32>
    %185 = arith.cmpf olt, %150, %184 : vector<16x1xf32>
    %186 = arith.andi %182, %185 : vector<16x1xi1>
    %187 = arith.andi %169, %180 : vector<16x1xi1>
    %cst_33 = arith.constant 1.000000e+00 : f32
    %188 = vector.broadcast %cst_33 : f32 to vector<16x1xf32>
    %189 = arith.subf %188, %151 : vector<16x1xf32>
    %cst_34 = arith.constant 1.000000e+00 : f32
    %190 = vector.broadcast %cst_34 : f32 to vector<16x1xf32>
    %191 = arith.subf %190, %152 : vector<16x1xf32>
    %192 = arith.mulf %189, %191 : vector<16x1xf32>
    %cst_35 = arith.constant 0.000000e+00 : f32
    %193 = vector.broadcast %cst_35 : f32 to vector<16x1xf32>
    %194 = arith.select %187, %192, %193 : vector<16x1xi1>, vector<16x1xf32>
    %195 = arith.andi %175, %180 : vector<16x1xi1>
    %cst_36 = arith.constant 1.000000e+00 : f32
    %196 = vector.broadcast %cst_36 : f32 to vector<16x1xf32>
    %197 = arith.subf %196, %152 : vector<16x1xf32>
    %198 = arith.mulf %151, %197 : vector<16x1xf32>
    %cst_37 = arith.constant 0.000000e+00 : f32
    %199 = vector.broadcast %cst_37 : f32 to vector<16x1xf32>
    %200 = arith.select %195, %198, %199 : vector<16x1xi1>, vector<16x1xf32>
    %201 = arith.andi %169, %186 : vector<16x1xi1>
    %cst_38 = arith.constant 1.000000e+00 : f32
    %202 = vector.broadcast %cst_38 : f32 to vector<16x1xf32>
    %203 = arith.subf %202, %151 : vector<16x1xf32>
    %204 = arith.mulf %203, %152 : vector<16x1xf32>
    %cst_39 = arith.constant 0.000000e+00 : f32
    %205 = vector.broadcast %cst_39 : f32 to vector<16x1xf32>
    %206 = arith.select %201, %204, %205 : vector<16x1xi1>, vector<16x1xf32>
    %207 = arith.andi %175, %186 : vector<16x1xi1>
    %208 = arith.mulf %151, %152 : vector<16x1xf32>
    %cst_40 = arith.constant 0.000000e+00 : f32
    %209 = vector.broadcast %cst_40 : f32 to vector<16x1xf32>
    %210 = arith.select %207, %208, %209 : vector<16x1xi1>, vector<16x1xf32>
    %211 = vector.broadcast %128 : i32 to vector<16x1xi32>
    %212 = arith.muli %164, %211 : vector<16x1xi32>
    %213 = arith.addi %212, %158 : vector<16x1xi32>
    %214 = tpu.iota {dimensions = array<i32: 1>} : vector<1x256xi32>
    %215 = vector.broadcast %126 : i32 to vector<1x256xi32>
    %216 = arith.addi %214, %215 : vector<1x256xi32>
    %217 = vector.broadcast %216 : vector<1x256xi32> to vector<16x256xi32>
    %218 = vector.broadcast %213 : vector<16x1xi32> to vector<16x256xi32>
    %219 = arith.cmpi eq, %217, %218 : vector<16x256xi32>
    %cst_41 = arith.constant 0.000000e+00 : f32
    %220 = vector.shape_cast %194 : vector<16x1xf32> to vector<16x1xf32>
    %221 = vector.broadcast %220 : vector<16x1xf32> to vector<16x256xf32>
    %222 = vector.broadcast %cst_41 : f32 to vector<16x256xf32>
    %223 = arith.select %219, %221, %222 : vector<16x256xi1>, vector<16x256xf32>
    %c1_i32_42 = arith.constant 1 : i32
    %224 = vector.broadcast %c1_i32_42 : i32 to vector<16x1xi32>
    %225 = arith.addi %213, %224 : vector<16x1xi32>
    %226 = vector.broadcast %216 : vector<1x256xi32> to vector<16x256xi32>
    %227 = vector.broadcast %225 : vector<16x1xi32> to vector<16x256xi32>
    %228 = arith.cmpi eq, %226, %227 : vector<16x256xi32>
    %cst_43 = arith.constant 0.000000e+00 : f32
    %229 = vector.shape_cast %200 : vector<16x1xf32> to vector<16x1xf32>
    %230 = vector.broadcast %229 : vector<16x1xf32> to vector<16x256xf32>
    %231 = vector.broadcast %cst_43 : f32 to vector<16x256xf32>
    %232 = arith.select %228, %230, %231 : vector<16x256xi1>, vector<16x256xf32>
    %233 = arith.addf %223, %232 : vector<16x256xf32>
    %234 = vector.broadcast %128 : i32 to vector<16x1xi32>
    %235 = arith.addi %213, %234 : vector<16x1xi32>
    %236 = vector.broadcast %216 : vector<1x256xi32> to vector<16x256xi32>
    %237 = vector.broadcast %235 : vector<16x1xi32> to vector<16x256xi32>
    %238 = arith.cmpi eq, %236, %237 : vector<16x256xi32>
    %cst_44 = arith.constant 0.000000e+00 : f32
    %239 = vector.shape_cast %206 : vector<16x1xf32> to vector<16x1xf32>
    %240 = vector.broadcast %239 : vector<16x1xf32> to vector<16x256xf32>
    %241 = vector.broadcast %cst_44 : f32 to vector<16x256xf32>
    %242 = arith.select %238, %240, %241 : vector<16x256xi1>, vector<16x256xf32>
    %243 = arith.addf %233, %242 : vector<16x256xf32>
    %c1_i32_45 = arith.constant 1 : i32
    %244 = arith.addi %128, %c1_i32_45 : i32
    %245 = vector.broadcast %244 : i32 to vector<16x1xi32>
    %246 = arith.addi %213, %245 : vector<16x1xi32>
    %247 = vector.broadcast %216 : vector<1x256xi32> to vector<16x256xi32>
    %248 = vector.broadcast %246 : vector<16x1xi32> to vector<16x256xi32>
    %249 = arith.cmpi eq, %247, %248 : vector<16x256xi32>
    %cst_46 = arith.constant 0.000000e+00 : f32
    %250 = vector.shape_cast %210 : vector<16x1xf32> to vector<16x1xf32>
    %251 = vector.broadcast %250 : vector<16x1xf32> to vector<16x256xf32>
    %252 = vector.broadcast %cst_46 : f32 to vector<16x256xf32>
    %253 = arith.select %249, %251, %252 : vector<16x256xi1>, vector<16x256xf32>
    %254 = arith.addf %243, %253 : vector<16x256xf32>
    %c0_47 = arith.constant 0 : index
    %c0_48 = arith.constant 0 : index
    %c0_49 = arith.constant 0 : index
    %c0_50 = arith.constant 0 : index
    %255 = vector.load %arg12[%c0_47, %c0_48, %c0_49, %c0_50] : memref<1x1x256x8xbf16, #tpu.memory_space<vmem>>, vector<1x1x256x8xbf16>
    %256 = vector.shape_cast %255 : vector<1x1x256x8xbf16> to vector<256x8xbf16>
    %257 = arith.truncf %254 : vector<16x256xf32> to vector<16x256xbf16>
    %cst_51 = arith.constant dense<0.000000e+00> : vector<16x8xf32>
    %258 = tpu.matmul %257, %256, %cst_51 {dimension_numbers = #tpu.dot_dimension_numbers<[1], [0], [0], [1], [0, 0, 1, 1], [], []>} : vector<16x256xbf16>, vector<256x8xbf16>, vector<16x8xf32> -> vector<16x8xf32>
    %259 = arith.index_cast %124 : i32 to index
    %c0_52 = arith.constant 0 : index
    %c0_53 = arith.constant 0 : index
    %260 = vector.load %arg14[%259, %c0_52, %c0_53] : memref<4x16x8xf32, #tpu.memory_space<vmem>>, vector<1x16x8xf32>
    %261 = vector.shape_cast %260 : vector<1x16x8xf32> to vector<16x8xf32>
    %262 = arith.addf %261, %258 : vector<16x8xf32>
    %263 = arith.index_cast %124 : i32 to index
    %c0_54 = arith.constant 0 : index
    %c0_55 = arith.constant 0 : index
    %264 = vector.load %arg14[%263, %c0_54, %c0_55] : memref<4x16x8xf32, #tpu.memory_space<vmem>>, vector<1x16x8xf32>
    %265 = vector.shape_cast %264 : vector<1x16x8xf32> to vector<16x8xf32>
    %266 = vector.shape_cast %262 : vector<16x8xf32> to vector<1x16x8xf32>
    tpu.vector_store %arg14[%263, %c0_54, %c0_55], %266 {strides = array<i32>} : memref<4x16x8xf32, #tpu.memory_space<vmem>>, vector<1x16x8xf32>,
    %c3_i32_56 = arith.constant 3 : i32
    %267 = arith.cmpi eq, %arg2, %c3_i32_56 : i32
    %268 = arith.extui %267 : i1 to i32
    %c0_i32_57 = arith.constant 0 : i32
    %269 = arith.cmpi ne, %268, %c0_i32_57 : i32
    scf.if %269 {
      %cst_58 = arith.constant 9.99999974E-6 : f32
      %270 = vector.broadcast %cst_58 : f32 to vector<16x1xf32>
      %271 = arith.cmpf ogt, %100, %270 : vector<16x1xf32>
      %cst_59 = arith.constant -1.000000e+00 : f32
      %272 = vector.broadcast %cst_59 : f32 to vector<16x1xf32>
      %273 = arith.cmpf ogt, %113, %272 : vector<16x1xf32>
      %274 = arith.andi %271, %273 : vector<16x1xi1>
      %cst_60 = arith.constant 1.000000e+00 : f32
      %275 = vector.broadcast %cst_60 : f32 to vector<16x1xf32>
      %276 = arith.cmpf olt, %113, %275 : vector<16x1xf32>
      %277 = arith.andi %274, %276 : vector<16x1xi1>
      %cst_61 = arith.constant -1.000000e+00 : f32
      %278 = vector.broadcast %cst_61 : f32 to vector<16x1xf32>
      %279 = arith.cmpf ogt, %122, %278 : vector<16x1xf32>
      %280 = arith.andi %277, %279 : vector<16x1xi1>
      %cst_62 = arith.constant 1.000000e+00 : f32
      %281 = vector.broadcast %cst_62 : f32 to vector<16x1xf32>
      %282 = arith.cmpf olt, %122, %281 : vector<16x1xf32>
      %283 = arith.andi %280, %282 : vector<16x1xi1>
      %c0_63 = arith.constant 0 : index
      %c0_64 = arith.constant 0 : index
      %c0_65 = arith.constant 0 : index
      %284 = vector.load %arg14[%c0_63, %c0_64, %c0_65] : memref<4x16x8xf32, #tpu.memory_space<vmem>>, vector<1x16x8xf32>
      %285 = vector.shape_cast %284 : vector<1x16x8xf32> to vector<16x8xf32>
      %c0_66 = arith.constant 0 : index
      %c0_67 = arith.constant 0 : index
      %c0_68 = arith.constant 0 : index
      %c0_69 = arith.constant 0 : index
      %286 = vector.load %arg13[%c0_66, %c0_67, %c0_68, %c0_69] : memref<1x1x16x33xf32, #tpu.memory_space<vmem>>, vector<1x1x16x8xf32>
      %287 = vector.shape_cast %286 : vector<1x1x16x8xf32> to vector<16x8xf32>
      %288 = vector.shape_cast %285 : vector<16x8xf32> to vector<1x1x16x8xf32>
      tpu.vector_store %arg13[%c0_66, %c0_67, %c0_68, %c0_69], %288 {strides = array<i32>} : memref<1x1x16x33xf32, #tpu.memory_space<vmem>>, vector<1x1x16x8xf32>,
      %c1_70 = arith.constant 1 : index
      %c0_71 = arith.constant 0 : index
      %c0_72 = arith.constant 0 : index
      %289 = vector.load %arg14[%c1_70, %c0_71, %c0_72] : memref<4x16x8xf32, #tpu.memory_space<vmem>>, vector<1x16x8xf32>
      %290 = vector.shape_cast %289 : vector<1x16x8xf32> to vector<16x8xf32>
      %c0_73 = arith.constant 0 : index
      %c0_74 = arith.constant 0 : index
      %c0_75 = arith.constant 0 : index
      %c8 = arith.constant 8 : index
      %291 = vector.load %arg13[%c0_73, %c0_74, %c0_75, %c8] : memref<1x1x16x33xf32, #tpu.memory_space<vmem>>, vector<1x1x16x8xf32>
      %292 = vector.shape_cast %291 : vector<1x1x16x8xf32> to vector<16x8xf32>
      %293 = vector.shape_cast %290 : vector<16x8xf32> to vector<1x1x16x8xf32>
      tpu.vector_store %arg13[%c0_73, %c0_74, %c0_75, %c8], %293 {strides = array<i32>} : memref<1x1x16x33xf32, #tpu.memory_space<vmem>>, vector<1x1x16x8xf32>,
      %c2_76 = arith.constant 2 : index
      %c0_77 = arith.constant 0 : index
      %c0_78 = arith.constant 0 : index
      %294 = vector.load %arg14[%c2_76, %c0_77, %c0_78] : memref<4x16x8xf32, #tpu.memory_space<vmem>>, vector<1x16x8xf32>
      %295 = vector.shape_cast %294 : vector<1x16x8xf32> to vector<16x8xf32>
      %c0_79 = arith.constant 0 : index
      %c0_80 = arith.constant 0 : index
      %c0_81 = arith.constant 0 : index
      %c16 = arith.constant 16 : index
      %296 = vector.load %arg13[%c0_79, %c0_80, %c0_81, %c16] : memref<1x1x16x33xf32, #tpu.memory_space<vmem>>, vector<1x1x16x8xf32>
      %297 = vector.shape_cast %296 : vector<1x1x16x8xf32> to vector<16x8xf32>
      %298 = vector.shape_cast %295 : vector<16x8xf32> to vector<1x1x16x8xf32>
      tpu.vector_store %arg13[%c0_79, %c0_80, %c0_81, %c16], %298 {strides = array<i32>} : memref<1x1x16x33xf32, #tpu.memory_space<vmem>>, vector<1x1x16x8xf32>,
      %c3_82 = arith.constant 3 : index
      %c0_83 = arith.constant 0 : index
      %c0_84 = arith.constant 0 : index
      %299 = vector.load %arg14[%c3_82, %c0_83, %c0_84] : memref<4x16x8xf32, #tpu.memory_space<vmem>>, vector<1x16x8xf32>
      %300 = vector.shape_cast %299 : vector<1x16x8xf32> to vector<16x8xf32>
      %c0_85 = arith.constant 0 : index
      %c0_86 = arith.constant 0 : index
      %c0_87 = arith.constant 0 : index
      %c24 = arith.constant 24 : index
      %301 = vector.load %arg13[%c0_85, %c0_86, %c0_87, %c24] : memref<1x1x16x33xf32, #tpu.memory_space<vmem>>, vector<1x1x16x8xf32>
      %302 = vector.shape_cast %301 : vector<1x1x16x8xf32> to vector<16x8xf32>
      %303 = vector.shape_cast %300 : vector<16x8xf32> to vector<1x1x16x8xf32>
      tpu.vector_store %arg13[%c0_85, %c0_86, %c0_87, %c24], %303 {strides = array<i32>} : memref<1x1x16x33xf32, #tpu.memory_space<vmem>>, vector<1x1x16x8xf32>,
      %304 = arith.extui %283 : vector<16x1xi1> to vector<16x1xi32>
      %305 = arith.sitofp %304 : vector<16x1xi32> to vector<16x1xf32>
      %c0_88 = arith.constant 0 : index
      %c0_89 = arith.constant 0 : index
      %c0_90 = arith.constant 0 : index
      %c32 = arith.constant 32 : index
      %306 = vector.load %arg13[%c0_88, %c0_89, %c0_90, %c32] : memref<1x1x16x33xf32, #tpu.memory_space<vmem>>, vector<1x1x16x1xf32>
      %307 = vector.shape_cast %306 : vector<1x1x16x1xf32> to vector<16x1xf32>
      %308 = vector.shape_cast %305 : vector<16x1xf32> to vector<1x1x16x1xf32>
      tpu.vector_store %arg13[%c0_88, %c0_89, %c0_90, %c32], %308 {strides = array<i32>} : memref<1x1x16x33xf32, #tpu.memory_space<vmem>>, vector<1x1x16x1xf32>,
    } else {
    }
    return
  }
  func.func @transform_0(%arg0: i32, %arg1: i32, %arg2: i32) -> i32 {
    %c0_i32 = arith.constant 0 : i32
    %c0_i32_0 = arith.constant 0 : i32
    return %c0_i32 : i32
  }
  func.func @transform_1(%arg0: i32, %arg1: i32, %arg2: i32) -> i32 {
    %c0_i32 = arith.constant 0 : i32
    %c0_i32_0 = arith.constant 0 : i32
    return %c0_i32 : i32
  }
  func.func @transform_2(%arg0: i32, %arg1: i32, %arg2: i32) -> i32 {
    %c0_i32 = arith.constant 0 : i32
    %c0_i32_0 = arith.constant 0 : i32
    return %c0_i32 : i32
  }
  func.func @transform_3(%arg0: i32, %arg1: i32, %arg2: i32) -> i32 {
    %c0_i32 = arith.constant 0 : i32
    %c0_i32_0 = arith.constant 0 : i32
    return %c0_i32 : i32
  }
  func.func @transform_4(%arg0: i32, %arg1: i32, %arg2: i32) -> i32 {
    %c0_i32 = arith.constant 0 : i32
    %c0_i32_0 = arith.constant 0 : i32
    return %c0_i32 : i32
  }
  func.func @transform_5(%arg0: i32, %arg1: i32, %arg2: i32) -> i32 {
    %c0_i32 = arith.constant 0 : i32
    %c0_i32_0 = arith.constant 0 : i32
    return %c0_i32 : i32
  }
  func.func @transform_6(%arg0: i32, %arg1: i32, %arg2: i32) -> i32 {
    %c0_i32 = arith.constant 0 : i32
    %c0_i32_0 = arith.constant 0 : i32
    return %c0_i32 : i32
  }
  func.func @transform_7(%arg0: i32, %arg1: i32, %arg2: i32) -> i32 {
    %c0_i32 = arith.constant 0 : i32
    %c0_i32_0 = arith.constant 0 : i32
    return %c0_i32 : i32
  }
  func.func @transform_8(%arg0: i32, %arg1: i32, %arg2: i32) -> (i32, i32, i32) {
    %c0_i32 = arith.constant 0 : i32
    %c0_i32_0 = arith.constant 0 : i32
    %c0_i32_1 = arith.constant 0 : i32
    return %arg0, %c0_i32, %c0_i32_0 : i32, i32, i32
  }
  func.func @transform_9(%arg0: i32, %arg1: i32, %arg2: i32) -> (i32, i32, i32, i32) {
    %c0_i32 = arith.constant 0 : i32
    %c0_i32_0 = arith.constant 0 : i32
    return %arg0, %arg1, %arg2, %c0_i32 : i32, i32, i32, i32
  }
  func.func @transform_10(%arg0: i32, %arg1: i32, %arg2: i32) -> (i32, i32, i32, i32) {
    %c0_i32 = arith.constant 0 : i32
    %c0_i32_0 = arith.constant 0 : i32
    %c0_i32_1 = arith.constant 0 : i32
    return %arg0, %arg1, %c0_i32, %c0_i32_0 : i32, i32, i32, i32
  }
}

</mosaic_0001>

<bundles_post_ra>
// kernel: tpu_custom_call.1
= control target key start
LH: loop header
LB: loop body
LE: loop exit
PB: predicated region body
PF: predicated region fallthrough
CT: control target
= control target key end

     0   :  { %s2606_s0 = inlined_call_operand.vmem [shape: f32[6], index: 0, kind: input, shape index: {}]   ;;  %s2607_s1 = inlined_call_operand.vmem [shape: f32[2], index: 1, kind: input, shape index: {}]   ;;  %s2608_s2 = inlined_call_operand.vmem [shape: f32[192], index: 2, kind: input, shape index: {}]   ;;  %s2609_s3 = inlined_call_operand.vmem [shape: s32[4], index: 3, kind: input, shape index: {}]   ;;  %s2610_s4 = inlined_call_operand.vmem [shape: s32[4], index: 4, kind: input, shape index: {}]   ;;  %s2611_s5 = inlined_call_operand.vmem [shape: s32[4], index: 5, kind: input, shape index: {}]   ;;  %s2612_s6 = inlined_call_operand.vmem [shape: f32[4], index: 6, kind: input, shape index: {}]   ;;  %s2613_s7 = inlined_call_operand.vmem [shape: f32[4], index: 7, kind: input, shape index: {}]   ;;  %s2614_s8 = inlined_call_operand.vmem [shape: f32[2,16,3], index: 8, kind: input, shape index: {}]   ;;  %s2615_s9 = inlined_call_operand.vmem [shape: bf16[2,6,1024,8], index: 9, kind: input, shape index: {}]   ;;  %s2616_s10 = inlined_call_operand.hbm [shape: f32[2,6,16,33], index: 10, kind: output, shape index: {}]  }
   0x1   :  { %2632 = sst [smem:[#allocation32_spill]] %s2606_s0 }
   0x2   :  { %2633 = sst [smem:[#allocation33_spill]] %s2607_s1 }
   0x3   :  { %2634 = sst [smem:[#allocation34_spill]] %s2608_s2 }
   0x4   :  { %2635 = sst [smem:[#allocation35_spill]] %s2609_s3 }
   0x5   :  { %2636 = sst [smem:[#allocation36_spill]] %s2610_s4 }
   0x6   :  { %2637 = sst [smem:[#allocation37_spill]] %s2616_s10 }
   0x7   :  { %15 = vsyncpa [#allocation5], 0 }
   0x8   :  { %16 = vsyncpa [#allocation7], 0 }
   0x9   :  { %17 = vsyncpa [#allocation10], 0 }
   0xa   :  { %18 = vsyncpa [#allocation13], 0 }
   0xb   :  { %19 = vsyncpa [#allocation16], 0 }
   0xc   :  { %20 = vsyncpa [#allocation4], 0 }
   0xd   :  { %22 = vsyncpa [#allocation4 + $0x1], 0  ;;  %s2068_s13 = smov 0   ;;  %s2070_s14 = smov 0  }
   0xe   :  { %s2072_s15 = smov 0   ;;  %s2074_s16 = smov 0  }
   0xf   :  { %s2076_s17 = smov 0   ;;  %s2078_s18 = smov 0  }
  0x10   :  { %s2080_s19 = smov 0   ;;  %s2082_s20 = smov 0  }
  0x11   :  { %s2084_s21 = smov 0   ;;  %s2086_s22 = smov 0  }
  0x12 LB: > { %2638 = sst [smem:[#allocation24_spill]] %s1955_s13  ;;  %s1424_s23 = sadd.s32 4294967295, %s1991_s22   ;;  %s1991_s22 = sphi %s2086_s22, %s28_s22   ;;  %s1987_s21 = sphi %s2084_s21, %s2691_s21   ;;  %s1983_s20 = sphi %s2082_s20, %s2686_s20   ;;  %s1979_s19 = sphi %s2080_s19, %s2685_s19   ;;  %s1975_s18 = sphi %s2078_s18, %s2690_s18   ;;  %s1971_s17 = sphi %s2076_s17, %s2684_s17   ;;  %s1967_s16 = sphi %s2074_s16, %s2683_s16   ;;  %s1963_s15 = sphi %s2072_s15, %s2689_s15   ;;  %s1959_s14 = sphi %s2070_s14, %s2688_s14   ;;  %s1955_s13 = sphi %s2068_s13, %s2687_s13  }
  0x13   : > { %2639 = sst [smem:[#allocation25_spill]] %s1979_s19  ;;  %s1425_s24 = sadd.s32 4294967294, %s1991_s22  }
  0x14   : > { %2640 = sst [smem:[#allocation26_spill]] %s1983_s20  ;;  %s40_s25 = sadd.s32 1, %s1979_s19 }
  0x15   : > { %2641 = sst [smem:[#allocation27_spill]] %s1991_s22  ;;  %s43_s26 = sadd.s32 1, %s1983_s20 }
  0x16   : > { %p41_p0 = scmp.ge.s32.totalorder %s40_s25, 4  ;;  %s47_s27 = sadd.s32 1, %s1987_s21 }
  0x17   : > { %s280_s28 = sadd.s32 1, %s1963_s15  ;;  %p290_p1 = scmp.ne.s32.totalorder %s1963_s15, %s1959_s14 }
  0x18   : > { %s2693_s25 = smov (%p41_p0, %s40_s25), 0  ;;  %s2695_s26 = smov (!%p41_p0, %s43_s26), %s1983_s20 }
  0x19   : > { %2642 = sst [smem:[#allocation28_spill]] %s2693_s25  ;;  %p291_p2 = scmp.eq.s32.totalorder %s1424_s23, 47 }
  0x1a   : > { %p296_p3 = scmp.ne.s32.totalorder %s1959_s14, %s1955_s13  ;;  %p45_p4 = scmp.ge.s32.totalorder %s2695_s26, 6 }
  0x1b   : > { %p297_p5 = scmp.eq.s32.totalorder %s1425_s24, 47  ;;  %p2131_p6 = por %p291_p2, %p290_p1 }
  0x1c   : > { %p1426_p7 = scmp.ge.s32.totalorder %s1991_s22, 1  ;;  %s2697_s26 = smov (%p45_p4, %s2695_s26), 0 }
  0x1d   : > { %s2643_s29 = scalar_select %p2131_p6, 1, 0 }
  0x1e   : > { %2645 = sst [smem:[#allocation30_spill]] %s2697_s26  ;;  %s2699_s27 = smov (!%p45_p4, %s47_s27), %s1987_s21 }
  0x1f   : > { %2644 = sst [smem:[#allocation29_spill]] %s2643_s29  ;;  %s276_s30 = ssub.s32 %s1983_s20, %s2697_s26 }
  0x20   : > { %p2141_p8 = por %p297_p5, %p296_p3  ;;  %p49_p9 = scmp.ge.s32.totalorder %s2699_s27, 2 }
  0x21   : > { %p304_p10 = scmp.lt.s32.totalorder %s1991_s22, 49  ;;  %p2146_p11 = scmp.eq.s32.totalorder %s1424_s23, 0 }
  0x22   : > { %s2646_s11 = scalar_select %p2141_p8, 1, 0 }
  0x23   : > { %s2648_s12 = scalar_select %p2146_p11, 1, 0 }
  0x24   : > { %2647 = sst [smem:[#allocation31_spill]] %s2646_s11  ;;  %s2701_s27 = smov (%p49_p9, %s2699_s27), 0 }
  0x25   : > { %p2152_p12 = pnand %p1426_p7, %p304_p10  ;;  %s2650_s1 = sld [smem:[#allocation33_spill]] }
  0x26   : > { %s275_s19 = ssub.s32 %s1987_s21, %s2701_s27  ;;  %s2652_s3 = sld [smem:[#allocation35_spill]] }
  0x27   : > { %s2649_s24 = scalar_select %p2152_p12, 1, 0 }
  0x28   : > { %s277_s11 = sor.u32 %s276_s30, %s275_s19  ;;  %p1565_p13 = pneg %p2152_p12 }
  0x29   : > { %p278_p0 = scmp.eq.s32.totalorder %s277_s11, 0 }
  0x2a   : > { %p2165_p1 = pnand %p2146_p11, %p1565_p13 }
  0x2b   : > { %s328_s20 = sshll.u32 %s2650_s1, 4  ;;  %s329_s20 = int_to_ptr.vmem [resolvable:$true] %s328_s20 }
  0x2c   : > { %s350_s10 = sshll.u32 %s2652_s3, 4  ;;  %s1741_s25 = scalar_lea.vmem %s329_s20, 16  ;;  %s351_s10 = int_to_ptr.vmem [resolvable:$true] %s350_s10 }
  0x2d   : > { %s2173_s29 = scalar_select %p278_p0, %s1963_s15, %s280_s28  }
  0x2e   : > { %p1742_p2 = scmp.ne.s32.totalorder %s329_s20, %s1741_s25  ;;  %p2177_p3 = pneg %p2165_p1 }
  0x2f   : > { %p1749_p7 = scmp.lt.s32.totalorder %s329_s20, %s329_s20  ;;  %p1750_p9 = scmp.lt.s32.totalorder %s1741_s25, %s1741_s25 }
  0x30   : > { %p1744_p4 = pnand %p2177_p3, %p1742_p2 }
  0x31   : > { %p1751_p10 = por %p1750_p9, %p1749_p7 }
  0x32   : > { %p1745_p5 = pneg %p1744_p4 }
  0x34   : > { %p1752_p13 = pnand %p1751_p10, %p1745_p5 }
  0x36   : > { %1755 = shalt.err (!%p1752_p13)
}
  0x37   : > { %s1993_s13 = smov [#allocation6]   ;;  %s372_s28 = sshll.u32 %s2611_s5, 4  ;;  %s373_s28 = int_to_ptr.vmem [resolvable:$true] %s372_s28 }
  0x38   : > { %1571 = dma.vmem_to_smem (!%p2165_p1), %s329_s20, 16, %s1993_s13, [#allocation7]  }
  0x39   : > { %s1756_s30 = scalar_lea.vmem %s351_s10, 16  ;;  %p1764_p4 = scmp.lt.s32.totalorder %s351_s10, %s351_s10 }
  0x3a   : > { %p1757_p0 = scmp.ne.s32.totalorder %s351_s10, %s1756_s30  ;;  %p1765_p6 = scmp.lt.s32.totalorder %s1756_s30, %s1756_s30 }
  0x3c   : > { %p1759_p8 = pnand %p1757_p0, %p2177_p3  ;;  %p1766_p11 = por %p1765_p6, %p1764_p4 }
  0x3e   : > { %p1760_p2 = pneg %p1759_p8 }
  0x40   : > { %p1767_p7 = pnand %p1766_p11, %p1760_p2 }
  0x42   : > { %1770 = shalt.err (!%p1767_p7)
}
  0x43   : > { %s1994_s11 = smov [#allocation9]   ;;  %s1771_s20 = scalar_lea.vmem %s373_s28, 16 }
  0x44   : > { %1577 = dma.vmem_to_smem (!%p2165_p1), %s351_s10, 16, %s1994_s11, [#allocation10]  }
  0x45   : > { %p1772_p5 = scmp.ne.s32.totalorder %s373_s28, %s1771_s20  ;;  %p1779_p13 = scmp.lt.s32.totalorder %s373_s28, %s373_s28 }
  0x46   : > { %p1780_p12 = scmp.lt.s32.totalorder %s1771_s20, %s1771_s20 }
  0x47   : > { %p1774_p9 = pnand %p1772_p5, %p2177_p3 }
  0x48   : > { %p1781_p0 = por %p1780_p12, %p1779_p13 }
  0x49   : > { %p1775_p10 = pneg %p1774_p9 }
  0x4b   : > { %p1782_p8 = pnand %p1781_p0, %p1775_p10 }
  0x4d   : > { %1785 = shalt.err (!%p1782_p8)
}
  0x4e   : > { %s1995_s25 = smov [#allocation12]   ;;  %s2654_s0 = sld [smem:[#allocation32_spill]] }
  0x4f   : > { %1583 = dma.vmem_to_smem (!%p2165_p1), %s373_s28, 16, %s1995_s25, [#allocation13]  }
  0x50   : > { %s2655_s2 = sld [smem:[#allocation34_spill]] }
  0x54   : > { %s317_s10 = sshll.u32 %s2654_s0, 4  ;;  %s318_s10 = int_to_ptr.vmem [resolvable:$true] %s317_s10 }
  0x55   : > { %s1786_s1 = scalar_lea.vmem %s318_s10, 16  ;;  %p1794_p2 = scmp.lt.s32.totalorder %s318_s10, %s318_s10 }
  0x56   : > { %s339_s11 = sshll.u32 %s2655_s2, 4  ;;  %p1787_p6 = scmp.ne.s32.totalorder %s318_s10, %s1786_s1  ;;  %s340_s11 = int_to_ptr.vmem [resolvable:$true] %s339_s11 }
  0x57   : > { %p1795_p4 = scmp.lt.s32.totalorder %s1786_s1, %s1786_s1 }
  0x58   : > { %p1789_p11 = pnand %p1787_p6, %p2177_p3 }
  0x59   : > { %p1796_p7 = por %p1795_p4, %p1794_p2 }
  0x5a   : > { %p1790_p12 = pneg %p1789_p11 }
  0x5c   : > { %p1797_p5 = pnand %p1796_p7, %p1790_p12 }
  0x5e   : > { %1800 = shalt.err (!%p1797_p5)
}
  0x5f   : > { %s1996_s28 = smov [#allocation3]   ;;  %s1801_s20 = scalar_lea.vmem %s340_s11, 32 }
  0x60   : > { %1568 = dma.vmem_to_smem (!%p2165_p1), %s318_s10, 16, %s1996_s28, [#allocation5]  }
  0x61   : > { %p1802_p9 = scmp.ne.s32.totalorder %s340_s11, %s1801_s20  ;;  %p1809_p0 = scmp.lt.s32.totalorder %s340_s11, %s340_s11 }
  0x62   : > { %p1810_p8 = scmp.lt.s32.totalorder %s1801_s20, %s1801_s20 }
  0x63   : > { %p1804_p10 = pnand %p1802_p9, %p2177_p3 }
  0x64   : > { %p1811_p6 = por %p1810_p8, %p1809_p0 }
  0x65   : > { %p1805_p13 = pneg %p1804_p10 }
  0x67   : > { %p1812_p11 = pnand %p1811_p6, %p1805_p13 }
  0x69   : > { %1815 = shalt.err (!%p1812_p11)
}
  0x6a   : > { %s1997_s1 = smov [#allocation8]   ;;  %s2656_s4 = sld [smem:[#allocation36_spill]] }
  0x6b   : > { %1574 = dma.vmem_to_smem (!%p2165_p1), %s340_s11, 32, %s1997_s1, [#allocation7]  }
  0x6c   : > { %s383_s30 = sshll.u32 %s2612_s6, 4  ;;  %s384_s30 = int_to_ptr.vmem [resolvable:$true] %s383_s30 }
  0x70   : > { %s361_s22 = sshll.u32 %s2656_s4, 4  ;;  %s362_s22 = int_to_ptr.vmem [resolvable:$true] %s361_s22 }
  0x71   : > { %s1816_s28 = scalar_lea.vmem %s362_s22, 16  ;;  %p1824_p7 = scmp.lt.s32.totalorder %s362_s22, %s362_s22 }
  0x72   : > { %p1817_p12 = scmp.ne.s32.totalorder %s362_s22, %s1816_s28  ;;  %p1825_p5 = scmp.lt.s32.totalorder %s1816_s28, %s1816_s28 }
  0x74   : > { %p1819_p2 = pnand %p1817_p12, %p2177_p3  ;;  %p1826_p9 = por %p1825_p5, %p1824_p7 }
  0x76   : > { %p1820_p4 = pneg %p1819_p2 }
  0x78   : > { %p1827_p10 = pnand %p1826_p9, %p1820_p4 }
  0x7a   : > { %1830 = shalt.err (!%p1827_p10)
}
  0x7b   : > { %s1998_s11 = smov [#allocation11]   ;;  %s1831_s20 = scalar_lea.vmem %s384_s30, 16 }
  0x7c   : > { %1580 = dma.vmem_to_smem (!%p2165_p1), %s362_s22, 16, %s1998_s11, [#allocation10]  }
  0x7d   : > { %p1832_p13 = scmp.ne.s32.totalorder %s384_s30, %s1831_s20  ;;  %p1839_p6 = scmp.lt.s32.totalorder %s384_s30, %s384_s30 }
  0x7e   : > { %p1840_p11 = scmp.lt.s32.totalorder %s1831_s20, %s1831_s20 }
  0x7f   : > { %p1834_p0 = pnand %p1832_p13, %p2177_p3 }
  0x80   : > { %p1841_p12 = por %p1840_p11, %p1839_p6 }
  0x81   : > { %p1835_p8 = pneg %p1834_p0 }
  0x83   : > { %p1842_p2 = pnand %p1841_p12, %p1835_p8 }
  0x85   : > { %1845 = shalt.err (!%p1842_p2)
}
  0x86   : > { %s1999_s1 = smov [#allocation14]   ;;  %s394_s22 = sshll.u32 %s2613_s7, 4  ;;  %s395_s22 = int_to_ptr.vmem [resolvable:$true] %s394_s22 }
  0x87   : > { %1586 = dma.vmem_to_smem (!%p2165_p1), %s384_s30, 16, %s1999_s1, [#allocation13]  }
  0x88   : > { %s1846_s10 = scalar_lea.vmem %s395_s22, 16  ;;  %p1854_p9 = scmp.lt.s32.totalorder %s395_s22, %s395_s22 }
  0x89   : > { %p1847_p4 = scmp.ne.s32.totalorder %s395_s22, %s1846_s10  ;;  %p1855_p10 = scmp.lt.s32.totalorder %s1846_s10, %s1846_s10 }
  0x8b   : > { %p1849_p7 = pnand %p1847_p4, %p2177_p3  ;;  %p1856_p13 = por %p1855_p10, %p1854_p9 }
  0x8d   : > { %p1850_p5 = pneg %p1849_p7 }
  0x8f   : > { %p1857_p0 = pnand %p1856_p13, %p1850_p5 }
  0x91   : > { %1860 = shalt.err (!%p1857_p0)
}
  0x92   : > { %s2000_s26 = smov [#allocation15]   ;;  %p2657_p8 = scmp.ne.s32.totalorder %s2649_s24, 0 }
  0x93   : > { %1589 = dma.vmem_to_smem (!%p2165_p1), %s395_s22, 16, %s2000_s26, [#allocation16]  }
  0x94   : > { %432 = sbr.rel (%p2657_p8) target bundleno = 912 (0x390), region = 60  ;;  %p2658_p6 = scmp.ne.s32.totalorder (!%p2657_p8), %s2648_s12, 0 }
  0x9b   : > { %1930 = dma.done.wait (%p2658_p6), [#allocation5], 16  }
  0x9c   : > { %1932 = vsyncadd (%p2658_p6), [#allocation5], 4294967280 }
  0x9d   : > { %1934 = dma.done.wait (%p2658_p6), [#allocation7], 48  }
  0x9e   : > { %1936 = vsyncadd (%p2658_p6), [#allocation7], 4294967248 }
  0x9f   : > { %1938 = dma.done.wait (%p2658_p6), [#allocation10], 32  }
  0xa0   : > { %1940 = vsyncadd (%p2658_p6), [#allocation10], 4294967264 }
  0xa1   : > { %1942 = dma.done.wait (%p2658_p6), [#allocation13], 32  }
  0xa2   : > { %1944 = vsyncadd (%p2658_p6), [#allocation13], 4294967264 }
  0xa3   : > { %1946 = dma.done.wait (%p2658_p6), [#allocation16], 16  }
  0xa4   : > { %1948 = vsyncadd (%p2658_p6), [#allocation16], 4294967280 }
  0xa5   : > { %466 = sfence }
  0xa6   : > { %s2631_s24 = sand.u32 1, %s1959_s14   ;;  %p512_p1 = scmp.lt.s32.totalorder %s1975_s18, 1 }
  0xa7   : > { %s1445_s23 = sshll.u32 %s2631_s24, 4  ;;  %s1448_s19 = sshll.u32 %s1967_s16, 5 }
  0xa8   : > { %p520_p3 = scmp.lt.s32.totalorder %s1971_s17, 5  ;;  %p522_p11 = scmp.lt.s32.totalorder %s1448_s19, 127 }
  0xa9   : > { %s513_s30 = scalar_select %p512_p1, %s1975_s18, 1 }
  0xaa   : > { %s521_s28 = scalar_select %p520_p3, %s1971_s17, 5 }
  0xab   : > { %s1494_s11 = sshll.u32 %s513_s30, 4  ;;  %s2703_s19 = smov (!%p522_p11, %s1448_s19), 127 }
  0xac   : > { %s2264_s1 = scalar_lea.vmem %s2614_s8, %s1494_s11  ;;  %s1449_s25 = sshll.u32 %s521_s28, 7 }
  0xad   : > { %s1517_s13 = smul.u32 768, %s513_s30  ;;  %s525_s22 = sadd.s32 %s1449_s25, %s2703_s19 }
  0xae   : > { %s2271_s3 = scalar_lea.vmem [#allocation17], %s1445_s23  ;;  %p1451_p12 = scmp.ne.s32.totalorder %s1967_s16, 0 }
  0xaf   : > { %s527_s10 = sadd.s32 %s1517_s13, %s525_s22  ;;  %vm536_vm0 = vcmask (!%p1451_p12), 64512   ;;  %v2001_v0 = vmov (!%p1451_p12), 0.0  }
  0xb0   : > { %s1450_s26 = sshll.u32 %s527_s10, 2  ;;  %535 = sbr.rel (%p1451_p12) target bundleno = 183 (0xb7), region = 96  ;;  %537 = vst.msk [vmem:[#allocation2] sm:$0xff] (!%p1451_p12), %vm536_vm0, %v2001_v0  ;;  %538 = vst.msk [vmem:[#allocation2 + $0x8] sm:$0xff] (!%p1451_p12), %vm536_vm0, %v2001_v0 }
  0xb1   : > { %s2269_s24 = scalar_lea.vmem %s2615_s9, %s1450_s26  ;;  %539 = vst.msk [vmem:[#allocation2 + $0x10] sm:$0xff] (!%p1451_p12), %vm536_vm0, %v2001_v0  ;;  %540 = vst.msk [vmem:[#allocation2 + $0x18] sm:$0xff] (!%p1451_p12), %vm536_vm0, %v2001_v0 }
  0xb2   : > { %541 = vst.msk [vmem:[#allocation2 + $0x20] sm:$0xff] (!%p1451_p12), %vm536_vm0, %v2001_v0  ;;  %542 = vst.msk [vmem:[#allocation2 + $0x28] sm:$0xff] (!%p1451_p12), %vm536_vm0, %v2001_v0 }
  0xb3   : > { %543 = vst.msk [vmem:[#allocation2 + $0x30] sm:$0xff] (!%p1451_p12), %vm536_vm0, %v2001_v0  ;;  %544 = vst.msk [vmem:[#allocation2 + $0x38] sm:$0xff] (!%p1451_p12), %vm536_vm0, %v2001_v0 }
  0xb7 PF: > { %s1455_s19 = sld [smem:[#allocation3 + $0x5]]  ;;  %s1456_s0 = sld [smem:[#allocation3 + $0x2]]  ;;  %v545_v1 = vld [vmem:[%s2264_s1] sm:$0xff]  ;;  %v546_v2 = vld [vmem:[%s2264_s1 + $0x8] sm:$0xff]  ;;  %v2004_v52 = vmov 0  }
  0xb8   : > { %s574_s2 = smul.u32 96, %s1975_s18  ;;  %s1457_s23 = sshll.u32 %s1971_s17, 4  ;;  %1711 = vset.pattern.permute.xlu0 %v2004_v52  ;;  %1710 = vset.pattern.permute.xlu1 %v2004_v52 }
  0xb9   : > { %s1453_s30 = sld [smem:[#allocation3 + $0x4]]  ;;  %s2278_s11 = sld [smem:[#allocation3 + $0x1]] }
  0xba   : > { %s2276_s28 = sadd.s32 %s1457_s23, %s574_s2  ;;  %s2003_s4 = smov 127  }
  0xbb   : > { %s596_s12 = sadd.s32 10, %s2276_s28  ;;  %s594_s20 = sadd.s32 9, %s2276_s28 }
  0xbc   : > { %s2283_s25 = sld [smem:[#allocation8 + %s596_s12]]  ;;  %s586_s10 = sadd.s32 5, %s2276_s28 }
  0xbd   : > { %s2285_s13 = sld [smem:[#allocation8 + %s594_s20]]  ;;  %s567_s22 = ssub.f32 %s1455_s19, %s1456_s0  ;;  %v571_v4 = vstv %s1456_s0 }
  0xbe   : > { %s578_s26 = sadd.s32 1, %s2276_s28  ;;  %s2290_s2 = sld [smem:[#allocation8 + %s586_s10]] }
  0xbf   : > { %v568_v3 = vstv %s567_s22  ;;  %s558_s23 = ssub.f32 %s1453_s30, %s2278_s11  ;;  %v562_v7 = vstv %s2278_s11  ;;  %s2294_s12 = sld [smem:[#allocation8 + %s578_s26]] }
  0xc0   : > { %v569_v5 = vmul.f32 %v568_v3, %v545_v1  ;;  %v570_v6 = vmul.f32 %v568_v3, %v546_v2  ;;  %s588_s1 = sadd.s32 6, %s2276_s28  ;;  %s2302_s19 = sld [smem:[#allocation6 + $0x1]] }
  0xc1   : > { %v559_v11 = vstv %s558_s23  ;;  %s717_s0 = sld [smem:[#allocation6]]  ;;  %s2304_s20 = sld [smem:[#allocation3 + $0x3]] }
  0xc2   : > { %v2296_v8 = vadd.f32 %v571_v4, %v569_v5  ;;  %v2298_v9 = vadd.f32 %v571_v4, %v570_v6  ;;  %v680_v10 = vstv %s2283_s25  ;;  %v560_v12 = vmul.f32 %v559_v11, %v545_v1  ;;  %s2308_s30 = sld [smem:[#allocation3]]  ;;  %s592_s11 = sadd.s32 8, %s2276_s28 }
  0xc3   : > { %v561_v13 = vmul.f32 %v559_v11, %v546_v2  ;;  %v667_v15 = vstv %s2285_s13  ;;  %s2311_s25 = sld [smem:[#allocation8 + %s588_s1]]  ;;  %s2002_s22 = smov 126  }
  0xc4   : > { %v681_v14 = vmul.f32 %v680_v10, %v2296_v8  ;;  %v563_v16 = vadd.f32 %v562_v7, %v560_v12  ;;  %v682_v18 = vmul.f32 %v680_v10, %v2298_v9  ;;  %s2315_s10 = sld [smem:[#allocation8 + %s592_s11]]  ;;  %s584_s26 = sadd.s32 4, %s2276_s28  ;;  %v635_v20 = vstv %s2290_s2 }
  0xc5   : > { %v564_v17 = vadd.f32 %v562_v7, %v561_v13  ;;  %s2319_s13 = sld [smem:[#allocation8 + %s584_s26]]  ;;  %s580_s1 = sadd.s32 2, %s2276_s28  ;;  %v603_v25 = vstv %s2294_s12 }
  0xc6   : > { %685 = vrot.lane.b32.xlu1 %v681_v14, %s2002_s22  ;;  %v668_v19 = vmul.f32 %v667_v15, %v563_v16  ;;  %s2322_s23 = sld [smem:[#allocation8 + %s2276_s28]]  ;;  %v705_v23 = vstv %s2302_s19  ;;  %v636_v28 = vmul.f32 %v635_v20, %v563_v16  ;;  %v604_v38 = vmul.f32 %v603_v25, %v563_v16  ;;  %s590_s19 = sadd.s32 7, %s2276_s28 }
  0xc7   : > { %v669_v21 = vmul.f32 %v667_v15, %v564_v17  ;;  %v637_v22 = vmul.f32 %v635_v20, %v564_v17  ;;  %v718_v24 = vstv %s717_s0  ;;  %s2331_s2 = sld [smem:[#allocation8 + %s580_s1]]  ;;  %1728 = vrcp.f32 %v705_v23  ;;  %p1486_p2 = scmp.ne.s32.totalorder %s1967_s16, 3 }
  0xc8   : > { %672 = vrot.lane.b32.xlu0 %v668_v19, %s2003_s4  ;;  %s549_s11 = ssub.f32 %s2304_s20, %s2308_s30  ;;  %1730 = vrcp.f32 %v718_v24  ;;  %v553_v27 = vstv %s2308_s30  ;;  %v605_v31 = vmul.f32 %v603_v25, %v564_v17  ;;  %s591_s0 = sld [smem:[#allocation8 + %s590_s19]] }
  0xc9   : > { %v648_v34 = vstv %s2311_s25  ;;  %s582_s20 = sadd.s32 3, %s2276_s28 }
  0xca   : > { %687 = vrot.lane.b32.xlu1 %v682_v18, %s2002_s22  ;;  %v550_v26 = vstv %s549_s11  ;;  %v664_v32 = vstv %s2315_s10  ;;  %v650_v43 = vmul.f32 %v648_v34, %v2298_v9  ;;  %v649_v48 = vmul.f32 %v648_v34, %v2296_v8  ;;  %s583_s30 = sld [smem:[#allocation8 + %s582_s20]]  ;;  %s2006_s20 = smov (!%p1486_p2), 16  }
  0xcb   : > { %v551_v29 = vmul.f32 %v550_v26, %v545_v1  ;;  %v552_v30 = vmul.f32 %v550_v26, %v546_v2  ;;  %v632_v33 = vstv %s2319_s13  ;;  %s2365_s10 = sld [smem:[#allocation15 + %s1967_s16]] }
  0xcc   : > { %674 = vrot.lane.b32.xlu0 %v669_v21, %s2003_s4  ;;  %v600_v37 = vstv %s2322_s23  ;;  %s2406_s11 = sld [smem:[#allocation12 + %s1967_s16]] }
  0xcd   : > { %v554_v35 = vadd.f32 %v553_v27, %v551_v29  ;;  %v555_v36 = vadd.f32 %v553_v27, %v552_v30  ;;  %v616_v46 = vstv %s2331_s2 }
  0xce   : > { %642 = vrot.lane.b32.xlu1 %v637_v22, %s2003_s4  ;;  %v618_v50 = vmul.f32 %v616_v46, %v2298_v9  ;;  %v617_v51 = vmul.f32 %v616_v46, %v2296_v8  ;;  %v661_v7 = vstv %s591_s0  ;;  %s2005_s0 = smov (!%p1486_p2), 8  }
  0xcf   : > { %v665_v39 = vmul.f32 %v664_v32, %v554_v35  ;;  %v666_v40 = vmul.f32 %v664_v32, %v555_v36  ;;  %v634_v41 = vmul.f32 %v632_v33, %v555_v36  ;;  %v633_v42 = vmul.f32 %v632_v33, %v554_v35 }
  0xd0   : > { %640 = vrot.lane.b32.xlu0 %v636_v28, %s2003_s4  ;;  %v602_v44 = vmul.f32 %v600_v37, %v555_v36  ;;  %v601_v45 = vmul.f32 %v600_v37, %v554_v35  ;;  %v629_v15 = vstv %s583_s30  ;;  %s2009_s30 = smov (!%p1486_p2), 32  }
  0xd1   : > { %v1729_v47 = vpop.eup %1728  ;;  %v735_v46 = vstv %s2365_s10  ;;  %s1467_s26 = sadd.f32 -1.0, %s2365_s10 }
  0xd2   : > { %610 = vrot.lane.b32.xlu1 %v605_v31, %s2003_s4  ;;  %v1731_v49 = vpop.eup %1730  ;;  %1518 = vpush %v1729_v47  ;;  %s759_s1 = sadd.f32 2.0, %s2365_s10  ;;  %s926_s2 = sadd.s32 1, %s2406_s11 }
  0xd3   : > { %1520 = vpush %v1731_v49 }
  0xd4   : > { %608 = vrot.lane.b32.xlu0 %v604_v38, %s2003_s4  ;;  %s598_s4 = sadd.s32 11, %s2276_s28 }
  0xd5   : > { %s599_s12 = sld [smem:[#allocation8 + %s598_s4]] }
  0xd6   : > { %655 = vrot.lane.b32.xlu1 %v650_v43, %s2002_s22  ;;  %s729_s4 = sld [smem:[#allocation11 + %s1967_s16]] }
  0xd8   : > { %653 = vrot.lane.b32.xlu0 %v649_v48, %s2002_s22 }
  0xda   : > { %623 = vrot.lane.b32.xlu1 %v618_v50, %s2002_s22 }
  0xdb   : > { %v693_v57 = vstv %s599_s12 }
  0xdc   : > { %621 = vrot.lane.b32.xlu0 %v617_v51, %s2002_s22  ;;  %s2362_s22 = sld [smem:[#allocation14 + %s1967_s16]] }
  0xe2   : > { %s1468_s13 = sadd.f32 -1.0, %s2362_s22 }
  0xe3   : > { %s767_s23 = sadd.f32 2.0, %s2362_s22 }
 0x103   : > { %s1519_s28 = spop %1518 }
 0x104   : > { %s1521_s25 = spop %1520  ;;  %v708_v28 = vstv %s1519_s28 }
 0x105   : > { %v721_v23 = vstv %s1521_s25 }
 0x138   : > { %v686_v53 = vpop.permute.xlu1 %685 }
 0x13a   : > { %v673_v54 = vpop.permute.xlu0 %672 }
 0x13b   : > { %v678_v55 = vadd.f32 %v673_v54, %v665_v39 }
 0x13c   : > { %v688_v56 = vpop.permute.xlu1 %687 }
 0x13d   : > { %v691_v58 = vadd.f32 %v686_v53, %v678_v55 }
 0x13e   : > { %v675_v59 = vpop.permute.xlu0 %674 }
 0x13f   : > { %v2354_v60 = vadd.f32 %v693_v57, %v691_v58  ;;  %v679_v61 = vadd.f32 %v675_v59, %v666_v40  ;;  %v744_v40 = vstv %s2362_s22 }
 0x140   : > { %v643_v62 = vpop.permute.xlu1 %642 }
 0x141   : > { %v696_v63 = vmax.f32 %v2354_v60, 1e-05  ;;  %v692_v0 = vadd.f32 %v688_v56, %v679_v61  ;;  %v647_v5 = vadd.f32 %v643_v62, %v634_v41  ;;  %v2385_v61 = vstv %s1467_s26 }
 0x142   : > { %v641_v1 = vpop.permute.xlu0 %640 }
 0x143   : > { %1732 = vrcp.f32 %v696_v63  ;;  %v2358_v2 = vadd.f32 %v693_v57, %v692_v0  ;;  %v646_v10 = vadd.f32 %v641_v1, %v633_v42  ;;  %v2387_v0 = vstv %s1468_s13 }
 0x144   : > { %v611_v3 = vpop.permute.xlu1 %610  ;;  %v2389_v1 = vstv %s767_s23 }
 0x145   : > { %v697_v4 = vmax.f32 %v2358_v2, 1e-05  ;;  %v615_v11 = vadd.f32 %v611_v3, %v602_v44 }
 0x146   : > { %v609_v6 = vpop.permute.xlu0 %608 }
 0x147   : > { %1734 = vrcp.f32 %v697_v4  ;;  %v614_v19 = vadd.f32 %v609_v6, %v601_v45 }
 0x148   : > { %v656_v8 = vpop.permute.xlu1 %655 }
 0x149   : > { %v660_v9 = vadd.f32 %v656_v8, %v647_v5 }
 0x14a   : > { %v654_v13 = vpop.permute.xlu0 %653 }
 0x14b   : > { %v663_v12 = vadd.f32 %v661_v7, %v660_v9  ;;  %v659_v14 = vadd.f32 %v654_v13, %v646_v10 }
 0x14c   : > { %v624_v16 = vpop.permute.xlu1 %623 }
 0x14d   : > { %v628_v17 = vadd.f32 %v624_v16, %v615_v11  ;;  %v1733_v18 = vpop.eup %1732  ;;  %v662_v20 = vadd.f32 %v661_v7, %v659_v14  ;;  %v762_v7 = vstv %s759_s1  ;;  %v1720_v16 = vld [vmem:[%s2269_s24 + $0x60] sm:$0xff]  }
 0x14e   : > { %v622_v22 = vpop.permute.xlu0 %621 }
 0x14f   : > { %v631_v21 = vadd.f32 %v629_v15, %v628_v17  ;;  %v627_v24 = vadd.f32 %v622_v22, %v614_v19  ;;  %v715_v25 = vmul.f32 %v1733_v18, %v662_v20  ;;  %v1723_v20 = vld [vmem:[%s2269_s24 + $0x28] sm:$0xff]   ;;  %v1724_v22 = vld [vmem:[%s2269_s24 + $0x70] sm:$0xff]  }
 0x151   : > { %v1735_v26 = vpop.eup %1734  ;;  %v630_v27 = vadd.f32 %v629_v15, %v627_v24  ;;  %v722_v29 = vmul.f32 %v721_v23, %v715_v25  ;;  %v927_v15 = vstv %s926_s2 }
 0x152   : > { %v703_v30 = vmul.f32 %v1735_v26, %v631_v21  ;;  %v716_v31 = vmul.f32 %v1735_v26, %v663_v12 }
 0x153   : > { %v702_v32 = vmul.f32 %v1733_v18, %v630_v27  ;;  %v1461_v33 = vadd.f32 -0.5, %v722_v29  ;;  %v836_v29 = vlaneseq }
 0x154   : > { %v710_v34 = vmul.f32 %v708_v28, %v703_v30  ;;  %v723_v35 = vmul.f32 %v721_v23, %v716_v31 }
 0x155   : > { %v709_v36 = vmul.f32 %v708_v28, %v702_v32  ;;  %v2367_v37 = vmul.f32 2.0, %v1461_v33 }
 0x156   : > { %v1460_v38 = vadd.f32 -0.5, %v710_v34  ;;  %v1462_v39 = vadd.f32 -0.5, %v723_v35 }
 0x157   : > { %v1459_v41 = vadd.f32 -0.5, %v709_v36  ;;  %v742_v42 = vadd.f32 1.0, %v2367_v37 }
 0x158   : > { %v2371_v43 = vmul.f32 2.0, %v1460_v38  ;;  %v2373_v44 = vmul.f32 2.0, %v1462_v39  ;;  %v1712_v38 = vld [vmem:[%s2269_s24 + $0x40] sm:$0xff]  }
 0x159   : > { %v2375_v45 = vmul.f32 2.0, %v1459_v41  ;;  %v745_v47 = vmul.f32 %v744_v40, %v742_v42  ;;  %v1713_v39 = vld [vmem:[%s2269_s24] sm:$0xff]   ;;  %1495 = vmatprep.subr.bf16.mxu0 %v1712_v38 }
 0x15a   : > { %v734_v48 = vadd.f32 1.0, %v2371_v43  ;;  %v743_v49 = vadd.f32 1.0, %v2373_v44  ;;  %1496 = vmatpush3.bf16.msra.mxu0 %v1713_v39 }
 0x15b   : > { %v733_v50 = vadd.f32 1.0, %v2375_v45  ;;  %v1465_v51 = vadd.f32 -1.0, %v745_v47 }
 0x15c   : > { %v737_v52 = vmul.f32 %v735_v46, %v734_v48  ;;  %v746_v53 = vmul.f32 %v744_v40, %v743_v49  ;;  %v831_v48 = vstv %s2406_s11 }
 0x15d   : > { %v736_v54 = vmul.f32 %v735_v46, %v733_v50  ;;  %v749_v55 = vmul.f32 0.5, %v1465_v51 }
 0x15e   : > { %v1464_v56 = vadd.f32 -1.0, %v737_v52  ;;  %v1466_v57 = vadd.f32 -1.0, %v746_v53 }
 0x15f   : > { %v1463_v58 = vadd.f32 -1.0, %v736_v54  ;;  %v753_v59 = vfloor.f32 %v749_v55 }
 0x160   : > { %v741_v62 = vmul.f32 0.5, %v1464_v56  ;;  %v750_v63 = vmul.f32 0.5, %v1466_v57  ;;  %v1714_v56 = vld [vmem:[%s2269_s24 + $0x48] sm:$0xff]  }
 0x161   : > { %v740_v3 = vmul.f32 0.5, %v1463_v58  ;;  %v757_v4 = vsub.f32 %v749_v55, %v753_v59  ;;  %vm789_vm1 = vcmp.ge.f32.partialorder %v753_v59, 0.0  ;;  %vm791_vm2 = vcmp.lt.f32.partialorder %v753_v59, %v744_v40  ;;  %v1715_v57 = vld [vmem:[%s2269_s24 + $0x8] sm:$0xff]   ;;  %1497 = vmatprep.subr.bf16.mxu0 %v1714_v56 }
 0x162   : > { %v752_v5 = vfloor.f32 %v741_v62  ;;  %v2391_v6 = vfloor.f32 %v750_v63  ;;  %vm795_vm3 = vcmp.ge.f32.partialorder %v753_v59, -1.0  ;;  %vm799_vm4 = vcmp.lt.f32.partialorder %v753_v59, %v2387_v0  ;;  %vm2395_vm7 = vmand %vm789_vm1, %vm791_vm2  ;;  %1498 = vmatpush3.bf16.msra.mxu0 %v1715_v57 }
 0x163   : > { %v751_v8 = vfloor.f32 %v740_v3  ;;  %v807_v9 = vsub.f32 1.0, %v757_v4  ;;  %v768_v10 = vmax.f32 %v753_v59, -4.0 }
 0x164   : > { %v756_v11 = vsub.f32 %v741_v62, %v752_v5  ;;  %v758_v12 = vsub.f32 %v750_v63, %v2391_v6  ;;  %vm776_vm5 = vcmp.ge.f32.partialorder %v752_v5, 0.0  ;;  %vm778_vm6 = vcmp.lt.f32.partialorder %v752_v5, %v735_v46 }
 0x165   : > { %v755_v14 = vsub.f32 %v740_v3, %v751_v8  ;;  %vm2399_vm8 = vmand %vm776_vm5, %vm778_vm6  ;;  %vm790_vm9 = vcmp.ge.f32.partialorder %v2391_v6, 0.0  ;;  %vm792_vm10 = vcmp.lt.f32.partialorder %v2391_v6, %v744_v40  ;;  %vm775_vm11 = vcmp.ge.f32.partialorder %v751_v8, 0.0 }
 0x166   : > { %vm2408_vm12 = vmand %vm790_vm9, %vm792_vm10  ;;  %v806_v17 = vsub.f32 1.0, %v756_v11  ;;  %v808_v18 = vsub.f32 1.0, %v758_v12  ;;  %vm777_vm13 = vcmp.lt.f32.partialorder %v751_v8, %v735_v46  ;;  %vm782_vm14 = vcmp.ge.f32.partialorder %v752_v5, -1.0 }
 0x167   : > { %vm804_vm15 = vmand %vm2399_vm8, %vm2408_vm12  ;;  %v805_v19 = vsub.f32 1.0, %v755_v14  ;;  %vm786_vm0 = vcmp.lt.f32.partialorder %v752_v5, %v2385_v61  ;;  %vm781_vm1 = vcmp.ge.f32.partialorder %v751_v8, -1.0  ;;  %vm785_vm2 = vcmp.lt.f32.partialorder %v751_v8, %v2385_v61 }
 0x168   : > { %vm2421_vm5 = vmand %vm795_vm3, %vm799_vm4  ;;  %v810_v21 = vmul.f32 %v808_v18, %v806_v17  ;;  %v816_v23 = vmul.f32 %v808_v18, %v756_v11  ;;  %v815_v24 = vmul.f32 %v807_v9, %v755_v14  ;;  %vm796_vm9 = vcmp.ge.f32.partialorder %v2391_v6, -1.0 }
 0x169   : > { %vm2425_vm6 = vmand %vm775_vm11, %vm777_vm13  ;;  %v809_v25 = vmul.f32 %v807_v9, %v805_v19  ;;  %vm800_vm3 = vcmp.lt.f32.partialorder %v2391_v6, %v2387_v0  ;;  %v822_v26 = vmul.f32 %v806_v17, %v758_v12  ;;  %v821_v27 = vmul.f32 %v805_v19, %v757_v4  ;;  %v1721_v17 = vld [vmem:[%s2269_s24 + $0x20] sm:$0xff]   ;;  %v1722_v19 = vld [vmem:[%s2269_s24 + $0x68] sm:$0xff]  }
 0x16a   : > { %vm803_vm10 = vmand %vm2425_vm6, %vm2395_vm7  ;;  %v812_v28 = vsel %vm804_vm15, %v810_v21, 0.0  ;;  %v760_v30 = vmax.f32 %v751_v8, -4.0  ;;  %v771_v31 = vmin.f32 %v2389_v1, %v768_v10  ;;  %v761_v32 = vmax.f32 %v752_v5, -4.0  ;;  %v1718_v10 = vld [vmem:[%s2269_s24 + $0x58] sm:$0xff]  }
 0x16b   : > { %vm2444_vm4 = vmand %vm782_vm14, %vm786_vm0  ;;  %859 = vperm.xlu0 %1711, %v812_v28   ;;  %v811_v33 = vsel %vm803_vm10, %v809_v25, 0.0  ;;  %v769_v34 = vmax.f32 %v2391_v6, -4.0  ;;  %v828_v35 = vmul.f32 %v758_v12, %v756_v11  ;;  %v827_v36 = vmul.f32 %v757_v4, %v755_v14  ;;  %v1716_v6 = vld [vmem:[%s2269_s24 + $0x50] sm:$0xff]   ;;  %v1719_v11 = vld [vmem:[%s2269_s24 + $0x18] sm:$0xff]  }
 0x16c   : > { %vm814_vm11 = vmand %vm2444_vm4, %vm2408_vm12  ;;  %854 = vperm.xlu1 %1710, %v811_v33   ;;  %v763_v42 = vmin.f32 %v762_v7, %v760_v30  ;;  %v1526_v46 = vtrunc.f32 %v771_v31  ;;  %v764_v47 = vmin.f32 %v762_v7, %v761_v32  ;;  %v1717_v7 = vld [vmem:[%s2269_s24 + $0x10] sm:$0xff]   ;;  %1499 = vmatprep.subr.bf16.mxu0 %v1716_v6  ;;  %v1727_v25 = vld [vmem:[%s2269_s24 + $0x38] sm:$0xff]   ;;  %v837_v32 = vand.u32 127, %v836_v29 }
 0x16d   : > { %v818_v40 = vsel %vm814_vm11, %v816_v23, 0.0  ;;  %vm2459_vm13 = vmand %vm781_vm1, %vm785_vm2  ;;  %v772_v49 = vmin.f32 %v2389_v1, %v769_v34  ;;  %1500 = vmatpush3.bf16.msra.mxu0 %v1717_v7  ;;  %v1725_v23 = vld [vmem:[%s2269_s24 + $0x30] sm:$0xff]  }
 0x16e   : > { %vm813_vm12 = vmand %vm2459_vm13, %vm2395_vm7  ;;  %v1522_v52 = vtrunc.f32 %v763_v42  ;;  %v1527_v53 = vcvt.f32.s32 %v1526_v46  ;;  %v1524_v54 = vtrunc.f32 %v764_v47  ;;  %1501 = vmatprep.subr.bf16.mxu0 %v1718_v10  ;;  %v838_v34 = vadd.s32 128, %v837_v32 }
 0x16f   : > { %v817_v50 = vsel %vm813_vm12, %v815_v24, 0.0  ;;  %vm2474_vm14 = vmand %vm796_vm9, %vm800_vm3  ;;  %885 = vperm.xlu0 %1711, %v818_v40   ;;  %v1528_v55 = vtrunc.f32 %v772_v49  ;;  %v1726_v24 = vld [vmem:[%s2269_s24 + $0x78] sm:$0xff]   ;;  %s728_s24 = sld [smem:[#allocation9 + %s1967_s16]]  ;;  %s2007_s16 = smov (!%p1486_p2), 24  }
 0x170   : > { %vm820_vm7 = vmand %vm2399_vm8, %vm2474_vm14  ;;  %880 = vperm.xlu1 %1710, %v817_v50   ;;  %v1523_v59 = vcvt.f32.s32 %v1522_v52  ;;  %v832_v61 = vmul.u32 %v1527_v53, %v831_v48  ;;  %v1525_v63 = vcvt.f32.s32 %v1524_v54 }
 0x171   : > { %v824_v58 = vsel %vm820_vm7, %v822_v26, 0.0  ;;  %vm819_vm15 = vmand %vm2425_vm6, %vm2421_vm5  ;;  %v1529_v0 = vcvt.f32.s32 %v1528_v55  ;;  %1502 = vmatpush3.bf16.msra.mxu0 %v1719_v11 }
 0x172   : > { %v823_v62 = vsel %vm819_vm15, %v821_v27, 0.0  ;;  %vm826_vm8 = vmand %vm2444_vm4, %vm2474_vm14  ;;  %v834_v1 = vadd.s32 %v1523_v59, %v832_v61  ;;  %1503 = vmatprep.subr.bf16.mxu0 %v1720_v16 }
 0x173   : > { %v830_v3 = vsel %vm826_vm8, %v828_v35, 0.0  ;;  %vm825_vm0 = vmand %vm2459_vm13, %vm2421_vm5  ;;  %915 = vperm.xlu0 %1711, %v824_v58   ;;  %v833_v4 = vmul.u32 %v1529_v0, %v831_v48 }
 0x174   : > { %v829_v5 = vsel %vm825_vm0, %v827_v36, 0.0  ;;  %910 = vperm.xlu1 %1710, %v823_v62   ;;  %v866_v12 = vadd.s32 1, %v834_v1  ;;  %v896_v14 = vadd.s32 %v834_v1, %v831_v48  ;;  %v928_v21 = vadd.s32 %v927_v15, %v834_v1 }
 0x175   : > { %v835_v8 = vadd.s32 %v1525_v63, %v833_v4  ;;  %1504 = vmatpush3.bf16.msra.mxu0 %v1721_v17  ;;  %v839_v36 = vstv %s729_s4  ;;  %s1485_s12 = sshll.u32 %s728_s24, 4 }
 0x176   : > { %1505 = vmatprep.subr.bf16.mxu0 %v1722_v19  ;;  %v840_v39 = vadd.s32 %v839_v36, %v837_v32  ;;  %v841_v40 = vadd.s32 %v839_v36, %v838_v34  ;;  %s1130_s19 = scalar_lea.vmem [#allocation2], %s1485_s12 }
 0x177   : > { %843 = vperm.xlu0 %1711, %v834_v1   ;;  %v867_v9 = vadd.s32 1, %v835_v8  ;;  %v897_v13 = vadd.s32 %v835_v8, %v831_v48  ;;  %v929_v18 = vadd.s32 %v927_v15, %v835_v8 }
 0x178   : > { %846 = vperm.xlu1 %1710, %v835_v8  }
 0x179   : > { %1506 = vmatpush3.bf16.msra.mxu0 %v1723_v20 }
 0x17a   : > { %1507 = vmatprep.subr.bf16.mxu0 %v1724_v22  ;;  %v1131_v22 = vld [vmem:[%s1130_s19] sm:$0xff] }
 0x17b   : > { %872 = vperm.xlu0 %1711, %v867_v9  }
 0x17c   : > { %869 = vperm.xlu1 %1710, %v866_v12  }
 0x17d   : > { %1508 = vmatpush3.bf16.msra.mxu0 %v1725_v23 }
 0x17e   : > { %1509 = vmatprep.subr.bf16.mxu0 %v1726_v24 }
 0x17f   : > { %902 = vperm.xlu0 %1711, %v897_v13  }
 0x180   : > { %899 = vperm.xlu1 %1710, %v896_v14  }
 0x181   : > { %1510 = vmatpush3.bf16.msra.mxu0 %v1727_v25 }
 0x183   : > { %934 = vperm.xlu0 %1711, %v929_v18  }
 0x184   : > { %931 = vperm.xlu1 %1710, %v928_v21  }
 0x187   : > { %947 = vperm.xlu0 %1711, %v830_v3  }
 0x188   : > { %942 = vperm.xlu1 %1710, %v829_v5  }
 0x1ea   : > { %v860_v26 = vpop.permute.xlu0 %859 }
 0x1eb   : > { %v855_v27 = vpop.permute.xlu1 %854 }
 0x1ee   : > { %v886_v28 = vpop.permute.xlu0 %885 }
 0x1ef   : > { %v881_v30 = vpop.permute.xlu1 %880 }
 0x1f2   : > { %v916_v31 = vpop.permute.xlu0 %915 }
 0x1f3   : > { %v911_v33 = vpop.permute.xlu1 %910 }
 0x1f6   : > { %v844_v35 = vpop.permute.xlu0 %843 }
 0x1f7   : > { %v847_v38 = vpop.permute.xlu1 %846  ;;  %vm848_vm5 = vcmp.eq.s32.totalorder %v840_v39, %v844_v35  ;;  %vm849_vm6 = vcmp.eq.s32.totalorder %v841_v40, %v844_v35 }
 0x1f8   : > { %vm850_vm3 = vcmp.eq.s32.totalorder %v840_v39, %v847_v38  ;;  %vm851_vm4 = vcmp.eq.s32.totalorder %v841_v40, %v847_v38  ;;  %v862_v50 = vsel %vm848_vm5, %v855_v27, 0.0  ;;  %v863_v51 = vsel %vm849_vm6, %v855_v27, 0.0 }
 0x1f9   : > { %v864_v54 = vsel %vm850_vm3, %v860_v26, 0.0  ;;  %v865_v55 = vsel %vm851_vm4, %v860_v26, 0.0  ;;  %v1132_v26 = vld [vmem:[%s1130_s19 + $0x8] sm:$0xff]  ;;  %vm1142_vm5 = vcmp.gt.f32.partialorder (!%p1486_p2), %v2354_v60, 1e-05  ;;  %vm1145_vm6 = vcmp.gt.f32.partialorder (!%p1486_p2), %v2371_v43, -1.0 }
 0x1fa   : > { %v873_v41 = vpop.permute.xlu0 %872  ;;  %vm1148_vm3 = vcmp.lt.f32.partialorder (!%p1486_p2), %v2375_v45, 1.0  ;;  %vm1149_vm4 = vcmp.lt.f32.partialorder (!%p1486_p2), %v2371_v43, 1.0 }
 0x1fb   : > { %v870_v42 = vpop.permute.xlu1 %869  ;;  %vm876_vm1 = vcmp.eq.s32.totalorder %v840_v39, %v873_v41  ;;  %vm877_vm2 = vcmp.eq.s32.totalorder %v841_v40, %v873_v41 }
 0x1fc   : > { %vm874_vm9 = vcmp.eq.s32.totalorder %v840_v39, %v870_v42  ;;  %vm875_vm10 = vcmp.eq.s32.totalorder %v841_v40, %v870_v42  ;;  %v890_v48 = vsel %vm876_vm1, %v886_v28, 0.0  ;;  %v891_v49 = vsel %vm877_vm2, %v886_v28, 0.0 }
 0x1fd   : > { %v888_v52 = vsel %vm874_vm9, %v881_v30, 0.0  ;;  %v889_v53 = vsel %vm875_vm10, %v881_v30, 0.0  ;;  %v894_v59 = vadd.f32 %v890_v48, %v864_v54  ;;  %v895_v61 = vadd.f32 %v891_v49, %v865_v55 }
 0x1fe   : > { %v903_v46 = vpop.permute.xlu0 %902  ;;  %v892_v1 = vadd.f32 %v888_v52, %v862_v50  ;;  %v893_v3 = vadd.f32 %v889_v53, %v863_v51  ;;  %vm1135_vm1 = vcmask 64512   ;;  %vm1144_vm2 = vcmp.gt.f32.partialorder (!%p1486_p2), %v2375_v45, -1.0 }
 0x1ff   : > { %vm906_vm11 = vcmp.eq.s32.totalorder %v840_v39, %v903_v46  ;;  %vm907_vm13 = vcmp.eq.s32.totalorder %v841_v40, %v903_v46  ;;  %v900_v47 = vpop.permute.xlu1 %899  ;;  %vm1143_vm9 = vcmp.gt.f32.partialorder (!%p1486_p2), %v2358_v2, 1e-05  ;;  %vm1146_vm10 = vmand (!%p1486_p2), %vm1142_vm5, %vm1144_vm2  ;;  %v2008_v45 = vmov (!%p1486_p2), 0.0  }
 0x200   : > { %vm904_vm12 = vcmp.eq.s32.totalorder %v840_v39, %v900_v47  ;;  %vm905_vm14 = vcmp.eq.s32.totalorder %v841_v40, %v900_v47  ;;  %v920_v56 = vsel %vm906_vm11, %v916_v31, 0.0  ;;  %v921_v57 = vsel %vm907_vm13, %v916_v31, 0.0  ;;  %vm1147_vm11 = vmand (!%p1486_p2), %vm1143_vm9, %vm1145_vm6 }
 0x201   : > { %v918_v62 = vsel %vm904_vm12, %v911_v33, 0.0  ;;  %v919_v63 = vsel %vm905_vm14, %v911_v33, 0.0  ;;  %v924_v4 = vadd.f32 %v920_v56, %v894_v59  ;;  %v925_v5 = vadd.f32 %v921_v57, %v895_v61  ;;  %vm1150_vm12 = vmand (!%p1486_p2), %vm1146_vm10, %vm1148_vm3 }
 0x202   : > { %v935_v58 = vpop.permute.xlu0 %934  ;;  %v922_v7 = vadd.f32 %v918_v62, %v892_v1  ;;  %v923_v8 = vadd.f32 %v919_v63, %v893_v3  ;;  %vm1152_vm13 = vcmp.gt.f32.partialorder (!%p1486_p2), %v2367_v37, -1.0  ;;  %vm1153_vm14 = vcmp.gt.f32.partialorder (!%p1486_p2), %v2373_v44, -1.0 }
 0x203   : > { %v932_v0 = vpop.permute.xlu1 %931  ;;  %vm938_vm7 = vcmp.eq.s32.totalorder %v840_v39, %v935_v58  ;;  %vm939_vm15 = vcmp.eq.s32.totalorder %v841_v40, %v935_v58  ;;  %vm1189_vm9 = vcmask (!%p1486_p2), 195712   ;;  %vm1203_vm10 = vcmask (!%p1486_p2), 261312  }
 0x204   : > { %vm936_vm8 = vcmp.eq.s32.totalorder %v840_v39, %v932_v0  ;;  %vm937_vm0 = vcmp.eq.s32.totalorder %v841_v40, %v932_v0  ;;  %vm1218_vm3 = vcmask (!%p1486_p2), 269568  }
 0x206   : > { %v948_v6 = vpop.permute.xlu0 %947 }
 0x207   : > { %v952_v9 = vsel %vm938_vm7, %v948_v6, 0.0  ;;  %v953_v10 = vsel %vm939_vm15, %v948_v6, 0.0  ;;  %v943_v11 = vpop.permute.xlu1 %942  ;;  %vm1151_vm7 = vmand (!%p1486_p2), %vm1147_vm11, %vm1149_vm4  ;;  %vm1156_vm15 = vcmp.lt.f32.partialorder (!%p1486_p2), %v2367_v37, 1.0 }
 0x208   : > { %v956_v12 = vadd.f32 %v952_v9, %v924_v4  ;;  %v957_v13 = vadd.f32 %v953_v10, %v925_v5  ;;  %v950_v14 = vsel %vm936_vm8, %v943_v11, 0.0  ;;  %v951_v15 = vsel %vm937_vm0, %v943_v11, 0.0  ;;  %vm1154_vm8 = vmand (!%p1486_p2), %vm1150_vm12, %vm1152_vm13 }
 0x209   : > { %v954_v16 = vadd.f32 %v950_v14, %v922_v7  ;;  %v955_v17 = vadd.f32 %v951_v15, %v923_v8  ;;  %vm1157_vm0 = vcmp.lt.f32.partialorder (!%p1486_p2), %v2373_v44, 1.0  ;;  %vm1155_vm2 = vmand (!%p1486_p2), %vm1151_vm7, %vm1153_vm14 }
 0x20a   : > { %vm1158_vm5 = vmand (!%p1486_p2), %vm1154_vm8, %vm1156_vm15 }
 0x20b   : > { %v990_v18 = vpack.c.bf16 %v956_v12, %v954_v16  ;;  %v991_v19 = vpack.c.bf16 %v957_v13, %v955_v17  ;;  %vm1159_vm6 = vmand (!%p1486_p2), %vm1155_vm2, %vm1157_vm0  ;;  %v1487_v35 = vsel (!%p1486_p2), %vm1158_vm5, 1.0, %v2008_v45 }
 0x20c   : > { %v1488_v37 = vsel (!%p1486_p2), %vm1159_vm6, 1.0, %v2008_v45 }
 0x20d   : > { %1120 = vmatprep.mubr.bf16.mxu0 %v991_v19  ;;  %v1736_v36 = vpack.i.bf16 (!%p1486_p2), %v1488_v37, %v1487_v35 }
 0x20e   : > { %1121 = vmatmul.mubr.bf16.vlgmr.msra.gmra.mrb[0].mxu0 %v990_v18 }
 0x2e1   : > { %v1511_v20 = vpop.f32.mrb[0].mxu0 }
 0x2e2   : > { %v1512_v21 = vpop.f32.mrb[1].mxu0 }
 0x2e3   : > { %v1513_v23 = vadd.f32 %v1512_v21, %v1511_v20  ;;  %v1514_v24 = vpop.f32.mrb[2].mxu0  ;;  %1141 = sbr.rel (%p1486_p2) target bundleno = 883 (0x373), region = 100 }
 0x2e4   : > { %v1515_v25 = vpop.f32.mrb[3].mxu0 }
 0x2e5   : > { %v1133_v27 = vadd.f32 %v1513_v23, %v1131_v22  ;;  %v1516_v28 = vadd.f32 %v1515_v25, %v1514_v24 }
 0x2e7   : > { %1136 = vst.msk [vmem:[%s1130_s19] sm:$0xff] %vm1135_vm1, %v1133_v27  ;;  %v1134_v29 = vadd.f32 %v1516_v28, %v1132_v26 }
 0x2e9   : > { %1137 = vst.msk [vmem:[%s1130_s19 + $0x8] sm:$0xff] %vm1135_vm1, %v1134_v29 }
 0x2f0   : > { %v1165_v30 = vld [vmem:[#allocation2 + $0x10] sm:$0xff]  ;;  %v1179_v31 = vld [vmem:[#allocation2 + $0x20] sm:$0xff]  ;;  %v1166_v32 = vld [vmem:[#allocation2 + $0x18] sm:$0xff] }
 0x2f1   : > { %1169 = vrot.lane.b32.xlu0 %v1165_v30, %s2005_s0  ;;  %1183 = vrot.lane.b32.xlu1 %v1179_v31, %s2006_s20  ;;  %v1180_v33 = vld [vmem:[#allocation2 + $0x28] sm:$0xff]  ;;  %v1160_v34 = vld [vmem:[#allocation2] sm:$0xff]  ;;  %v1193_v2 = vld [vmem:[#allocation2 + $0x30] sm:$0xff] }
 0x2f2   : > { %1162 = vst.msk [vmem:[%s2271_s3] sm:$0xff] %vm1135_vm1, %v1160_v34  ;;  %v1161_v60 = vld [vmem:[#allocation2 + $0x8] sm:$0xff]  ;;  %v1194_v43 = vld [vmem:[#allocation2 + $0x38] sm:$0xff] }
 0x2f3   : > { %1163 = vst.msk [vmem:[%s2271_s3 + $0x8] sm:$0xff] %vm1135_vm1, %v1161_v60  ;;  %vm1175_vm1 = vcmask 130112  }
 0x2f5   : > { %1171 = vrot.lane.b32.xlu0 %v1166_v32, %s2005_s0  ;;  %1185 = vrot.lane.b32.xlu1 %v1180_v33, %s2006_s20 }
 0x2f9   : > { %1197 = vrot.lane.b32.xlu0 %v1193_v2, %s2007_s16  ;;  %1199 = vrot.lane.b32.xlu1 %v1194_v43, %s2007_s16 }
 0x2fd   : > { %1737 = vrot.lane.b32.xlu0 %v1736_v36, %s2009_s30 }
 0x363   : > { %v1170_v44 = vpop.permute.xlu0 %1169  ;;  %v1184_v38 = vpop.permute.xlu1 %1183 }
 0x364   : > { %1176 = vst.msk [vmem:[%s2271_s3] sm:$0xff] %vm1175_vm1, %v1170_v44 }
 0x365   : > { %1190 = vst.msk [vmem:[%s2271_s3] sm:$0xff] %vm1189_vm9, %v1184_v38 }
 0x367   : > { %v1172_v39 = vpop.permute.xlu0 %1171  ;;  %v1186_v40 = vpop.permute.xlu1 %1185 }
 0x368   : > { %1177 = vst.msk [vmem:[%s2271_s3 + $0x8] sm:$0xff] %vm1175_vm1, %v1172_v39 }
 0x369   : > { %1191 = vst.msk [vmem:[%s2271_s3 + $0x8] sm:$0xff] %vm1189_vm9, %v1186_v40 }
 0x36b   : > { %v1198_v41 = vpop.permute.xlu0 %1197  ;;  %v1200_v42 = vpop.permute.xlu1 %1199 }
 0x36c   : > { %1204 = vst.msk [vmem:[%s2271_s3] sm:$0xff] %vm1203_vm10, %v1198_v41  ;;  %1205 = vst.msk [vmem:[%s2271_s3 + $0x8] sm:$0xff] %vm1203_vm10, %v1200_v42 }
 0x36f   : > { %v1738_v46 = vpop.permute.xlu0 %1737 }
 0x370   : > { %v1740_v47 = vunpack.i.h.bf16 %v1738_v46  ;;  %v1739_v48 = vunpack.i.l.bf16 %v1738_v46 }
 0x372   : > { %1219 = vst.msk [vmem:[%s2271_s3] sm:$0xff] %vm1218_vm3, %v1739_v48  ;;  %1220 = vst.msk [vmem:[%s2271_s3 + $0x8] sm:$0xff] %vm1218_vm3, %v1740_v47 }
 0x373 PF: > { %s2675_s28 = sld [smem:[#allocation29_spill]]  ;;  %s1490_s25 = sshll.u32 %s1971_s17, 1 }
 0x374   : > { %s1530_s22 = smul.u32 12, %s1975_s18  ;;  %s1237_s10 = sshll.u32 %s2271_s3, 4  ;;  %s2539_s10 = int_to_ptr.vmem [resolvable:$true] %s1237_s10 }
 0x375   : > { %s2676_s11 = sld [smem:[#allocation37_spill]]  ;;  %s2677_s4 = sand.u32 1, %s1959_s14  }
 0x376   : > { %s1234_s26 = sadd.s32 %s1530_s22, %s1490_s25  ;;  %s2548_s24 = scalar_lea.sflag [#allocation4], %s2677_s4 }
 0x377   : > { %s1491_s13 = sshll.u32 %s1234_s26, 7  ;;  %s1861_s12 = scalar_lea.vmem %s2539_s10, 256 }
 0x378   : > { %p1862_p4 = scmp.ne.s32.totalorder %s2539_s10, %s1861_s12  ;;  %s2010_s3 = smov [#allocation17]  }
 0x379   : > { %p2678_p7 = scmp.ne.s32.totalorder %s2675_s28, 0  ;;  %s1865_s17 = sshll.u32 %s2010_s3, 4  ;;  %s1866_s17 = int_to_ptr.vmem [resolvable:$false] %s1865_s17 }
 0x37a   : > { %s1867_s18 = scalar_lea.vmem %s1866_s17, 512  ;;  %p1868_p10 = scmp.lt.s32.totalorder %s2539_s10, %s1866_s17 }
 0x37b   : > { %s2544_s2 = scalar_lea.hbm %s2676_s11, %s1491_s13  ;;  %p1863_p5 = pnand %p1862_p4, %p2678_p7 }
 0x37c   : > { %p1869_p13 = scmp.lt.s32.totalorder %s1867_s18, %s1861_s12 }
 0x37d   : > { %p1864_p9 = pneg %p1863_p5 }
 0x37e   : > { %p1870_p0 = por %p1869_p13, %p1868_p10 }
 0x380   : > { %p1871_p8 = pnand %p1870_p0, %p1864_p9 }
 0x382   : > { %1874 = shalt.err (!%p1871_p8)
}
 0x383   : > { %s1875_s19 = scalar_lea.hbm %s2544_s2, 256  ;;  %s1879_s16 = scalar_lea.hbm %s2676_s11, 3072 }
 0x384   : > { %p1876_p6 = scmp.ne.s32.totalorder %s2544_s2, %s1875_s19  ;;  %p1880_p11 = scmp.lt.u32.totalorder %s2544_s2, %s2676_s11 }
 0x385   : > { %p1881_p12 = scmp.lt.u32.totalorder %s1879_s16, %s1875_s19  ;;  %p1883_p4 = scmp.lt.u32.totalorder %s1875_s19, %s2544_s2 }
 0x386   : > { %p1877_p1 = pnand %p1876_p6, %p2678_p7 }
 0x387   : > { %p1882_p2 = por %p1881_p12, %p1880_p11 }
 0x388   : > { %p1878_p3 = pneg %p1877_p1 }
 0x389   : > { %p1884_p5 = por %p1883_p4, %p1882_p2 }
 0x38b   : > { %p1885_p9 = pnand %p1884_p5, %p1878_p3 }
 0x38d   : > { %1888 = shalt.err (!%p1885_p9)
}
 0x38e   : > { %s2011_s22 = smov 128   ;;  %s2012_s26 = smov 8  }
 0x38f   : > { %1563 = dma.vmem_to_hbm [thread:$0]  (%p2678_p7), %s2539_s10, 256, %s2544_s2, %s2548_s24, %s2011_s22, %s2011_s22, %s2012_s26  }
 0x390 PF: > { %s2679_s13 = sld [smem:[#allocation27_spill]]  ;;  %s2680_s23 = sld [smem:[#allocation24_spill]] }
 0x391   : > { %s2681_s1 = sld [smem:[#allocation31_spill]] }
 0x396   : > { %p1610_p10 = scmp.ge.s32.totalorder %s2679_s13, 2  ;;  %s1252_s4 = sand.u32 1, %s2680_s23  }
 0x397   : > { %p2682_p13 = scmp.ne.s32.totalorder %s2681_s1, 0  ;;  %s1253_s12 = scalar_lea.sflag [#allocation4], %s1252_s4 }
 0x399   : > { %p1591_p0 = pnand %p1610_p10, %p2682_p13 }
 0x39b   : > { %1950 = dma.done.wait (!%p1591_p0), %s1253_s12, 256  }
 0x39c   : > { %1952 = vsyncadd (!%p1591_p0), %s1253_s12, 4294967040  ;;  %s28_s22 = sadd.s32 1, %s2679_s13   ;;  %s2683_s16 = sld [smem:[#allocation25_spill]] }
 0x39d   : > { %p25_p8 = scmp.ge.s32.totalorder %s28_s22, 50   ;;  %s2684_s17 = sld [smem:[#allocation26_spill]] }
 0x39e   : > { %s2685_s19 = sld [smem:[#allocation28_spill]]  ;;  %s2686_s20 = sld [smem:[#allocation30_spill]] }
 0x39f   : > { %s2687_s13 = smov %s1959_s14  ;;  %s2688_s14 = smov %s1963_s15 }
 0x3a0   : > { %s2689_s15 = smov %s2173_s29  ;;  %s2690_s18 = smov %s1987_s21 }
 0x3a1   : > { %s2691_s21 = smov %s2701_s27  ;;  %27 = sbr.rel (!%p25_p8) target bundleno = 18 (0x12), region = 143 }
 0x3a8   :  { %1258 = vsyncpa [#allocation4], 1 }
 0x3a9   :  { %1260 = vsyncpa [#allocation4 + $0x1], 1 }
 0x3aa   :  { %1261 = vsyncpa [#allocation5], 1 }
 0x3ab   :  { %1263 = vsyncpa [#allocation5 + $0x1], 1 }
 0x3ac   :  { %1264 = vsyncpa [#allocation7], 1 }
 0x3ad   :  { %1265 = vsyncpa [#allocation10], 1 }
 0x3ae   :  { %1266 = vsyncpa [#allocation13], 1 }
 0x3af   :  { %1267 = vsyncpa [#allocation16], 1 }

</bundles_post_ra>
